<compile_context>
chip_gen: v7x
topology: tpu7x:2x2x1
jax: 0.10.0
libtpu: 0.0.40
codegen_flags: <defaults>
</compile_context>

<pallas_src>
import functools

import jax
import jax.numpy as jnp
import numpy as np
from jax import lax
from jax.experimental import pallas as pl
from jax.experimental.pallas import tpu as pltpu

# ConvTranspose2d(k=4, s=2, p=1) parity decomposition:
#   output row oh = 2*i + ph uses input rows i + dh with transposed-kernel row kh
#   according to:  parity -> ((dh, kh), (dh, kh))     (same table for columns)
_TAPS = {0: ((0, 1), (-1, 3)), 1: ((1, 0), (0, 2))}


def _conv_kernel(x1_ref, w1_ref, b1_ref, w2_ref, y2_ref, stats_ref,
                 ypad_ref, patch_ref, *, C, H, W, PADP):
    """One grid step = one image.  Computes pre-BN conv output (parity-blocked)
    and accumulates per-channel sum / sum-of-squares across the grid."""
    HW = H * W
    L = HW + 2 * PADP                     # padded length of one parity block
    n = pl.program_id(0)

    @pl.when(n == 0)
    def _init():
        # Zero the staging scratch once (its padding must read as zero on every
        # step; the interior is fully rewritten per step) and the BN stats.
        ypad_ref[...] = jnp.zeros_like(ypad_ref)
        stats_ref[...] = jnp.zeros_like(stats_ref)

    # ---- ConvTranspose2d(C,C,4,s=2,p=1): one (C,4C)x(4C,HW) matmul / parity --
    for p in range(4):
        xcol = x1_ref[p * 4 * C:(p + 1) * 4 * C, :]                  # (4C,HW) bf16
        y1p = jnp.dot(w1_ref[p * C:(p + 1) * C, :], xcol,
                      preferred_element_type=jnp.float32)            # (C,HW) f32
        y1p = y1p + b1_ref[...]                                      # ConvT bias
        ypad_ref[:, p * L + PADP:p * L + PADP + HW] = y1p.astype(jnp.bfloat16)

    # Shared column-edge masks (row edges are handled by the zero padding).
    j_idx = lax.broadcasted_iota(jnp.int32, (1, HW), 1)
    if (W & (W - 1)) == 0:
        j_col = j_idx & (W - 1)
    else:
        j_col = j_idx % W
    left_ok = j_col > 0
    right_ok = j_col < (W - 1)

    # Source mapping for output parity (ph,pw) and 3x3 tap offset d in {-1,0,1}:
    # full-res row 2i+ph+d lives in parity sph at block row i+sh (same for cols).
    def hsrc(ph, d):
        return {(0, -1): (1, -1), (0, 0): (0, 0), (0, 1): (1, 0),
                (1, -1): (0, 0), (1, 0): (1, 0), (1, 1): (0, 1)}[(ph, d)]

    def wsrc(pw, d):
        return {(0, -1): (1, -1, 'L'), (0, 0): (0, 0, None), (0, 1): (1, 0, None),
                (1, -1): (0, 0, None), (1, 0): (1, 0, None), (1, 1): (0, 1, 'R')}[(pw, d)]

    s = jnp.zeros((C, 1), jnp.float32)
    ss = jnp.zeros((C, 1), jnp.float32)

    # ---- Conv2d(C,C,3,p=1): one (C,9C)x(9C,HW) matmul per output parity ------
    for ph in range(2):
        for pw in range(2):
            for t9, (dh, dw) in enumerate([(a - 1, b - 1)
                                           for a in range(3) for b in range(3)]):
                sph, sh = hsrc(ph, dh)
                spw, sw, mk = wsrc(pw, dw)
                start = (sph * 2 + spw) * L + PADP + sh * W + sw
                tap = ypad_ref[:, start:start + HW]                  # (C,HW) bf16
                if mk == 'L':
                    tap = jnp.where(left_ok, tap, 0)
                elif mk == 'R':
                    tap = jnp.where(right_ok, tap, 0)
                patch_ref[t9 * C:(t9 + 1) * C, :] = tap.astype(jnp.bfloat16)

            y2p = jnp.dot(w2_ref[...], patch_ref[...],
                          preferred_element_type=jnp.float32)        # (C,HW) f32
            # Conv2d bias intentionally omitted: it cancels exactly under the
            # batch-mean subtraction of training-mode BatchNorm.
            p_out = ph * 2 + pw
            y2_ref[:, p_out * HW:(p_out + 1) * HW] = y2p
            s = s + jnp.sum(y2p, axis=1, keepdims=True)
            ss = ss + jnp.sum(y2p * y2p, axis=1, keepdims=True)

    # Accumulate BN statistics in the resident (C,128) output block:
    # column 0 = sum, column 1 = sum of squares.
    col = lax.broadcasted_iota(jnp.int32, stats_ref.shape, 1)
    stats_ref[...] += jnp.where(col == 0, s, 0.0) + jnp.where(col == 1, ss, 0.0)


def _bn_relu_kernel(y2_ref, stats_ref, gamma_ref, beta_ref, out_ref, *, inv_m):
    """Second pass: BatchNorm (training batch stats, biased var, eps=1e-5)+ReLU."""
    ssum = stats_ref[:, 0:1]
    ssq = stats_ref[:, 1:2]
    mean = ssum * inv_m
    var = jnp.maximum(ssq * inv_m - mean * mean, 0.0)     # guard tiny negatives
    scale = gamma_ref[...] * lax.rsqrt(var + 1e-5)
    shift = beta_ref[...] - mean * scale
    out_ref[...] = jnp.maximum(y2_ref[...] * scale + shift, 0.0)


@jax.jit
def upsample_n_concat_t1(x_nchw, wT, bT, wC, bC, gamma, beta):
    """x_nchw: [N, C, H, W] (PyTorch layout).  Returns [N, C, 2H, 2W]."""
    N, C, H, W = x_nchw.shape
    H2, W2 = 2 * H, 2 * W
    HW = H * W
    M = N * H2 * W2
    # TODO(synk): pad C / HW for shapes that are not (8,128)-friendly.
    assert C % 8 == 0 and HW % 128 == 0, (C, HW)

    PADP = max(128, ((W + 1 + 127) // 128) * 128)   # geometry-derived padding
    assert PADP >= W + 1
    L = HW + 2 * PADP

    xf = x_nchw.astype(jnp.float32)
    xp = jnp.pad(xf, ((0, 0), (0, 0), (1, 1), (1, 1)))          # (N,C,H+2,W+2)

    # Per-parity 4-tap im2col (4x smaller than the dense 16-tap dilated im2col)
    # and the matching per-parity (C, 4C) weights.
    x_par, w_par = [], []
    for ph in range(2):
        for pw in range(2):
            cols, wcols = [], []
            for (dh, kh) in _TAPS[ph]:
                for (dw, kw) in _TAPS[pw]:
                    cols.append(xp[:, :, 1 + dh:1 + dh + H, 1 + dw:1 + dw + W]
                                .reshape(N, C, HW))
                    wcols.append(wT[:, :, kh, kw].T)             # (Cout, Cin)
            x_par.append(jnp.concatenate(cols, axis=1))          # (N, 4C, HW)
            w_par.append(jnp.concatenate(wcols, axis=1))         # (C, 4C)
    x1 = jnp.concatenate(x_par, axis=1)                          # (N, 16C, HW)
    x1 = jnp.transpose(x1, (1, 0, 2)).reshape(16 * C, N * HW).astype(jnp.bfloat16)
    w1 = jnp.concatenate(w_par, axis=0).astype(jnp.bfloat16)     # (4C, 4C)
    b1 = bT.reshape(C, 1).astype(jnp.float32)
    # Conv2d weight [C_out, C_in, 3, 3] -> (C, 9C), row = co, col = (kh*3+kw)*C+ci
    w2 = jnp.transpose(wC, (0, 2, 3, 1)).reshape(C, 9 * C).astype(jnp.bfloat16)
    g = gamma.reshape(C, 1).astype(jnp.float32)
    bt = beta.reshape(C, 1).astype(jnp.float32)
    del bC  # cancels exactly under training-mode BatchNorm (see kernel comment)

    conv_kernel = functools.partial(_conv_kernel, C=C, H=H, W=W, PADP=PADP)
    y2, stats = pl.pallas_call(
        conv_kernel,
        grid=(N,),
        out_shape=(jax.ShapeDtypeStruct((C, N * 4 * HW), jnp.float32),   # pre-BN
                   jax.ShapeDtypeStruct((C, 128), jnp.float32)),         # sum/sumsq
        in_specs=[pl.BlockSpec((16 * C, HW), lambda n: (0, n)),
                  pl.BlockSpec((4 * C, 4 * C), lambda n: (0, 0)),
                  pl.BlockSpec((C, 1), lambda n: (0, 0)),
                  pl.BlockSpec((C, 9 * C), lambda n: (0, 0))],
        out_specs=(pl.BlockSpec((C, 4 * HW), lambda n: (0, n)),
                   pl.BlockSpec((C, 128), lambda n: (0, 0))),
        scratch_shapes=[pltpu.VMEM((C, 4 * L), jnp.bfloat16),    # padded y1 staging
                        pltpu.VMEM((9 * C, HW), jnp.bfloat16)],  # 3x3 im2col patch
        compiler_params=pltpu.CompilerParams(
            dimension_semantics=("arbitrary",)),                 # BN accumulates
    )(x1, w1, b1, w2)

    bn_kernel = functools.partial(_bn_relu_kernel, inv_m=1.0 / M)
    out = pl.pallas_call(
        bn_kernel,
        grid=(N,),
        out_shape=jax.ShapeDtypeStruct((C, N * 4 * HW), jnp.float32),
        in_specs=[pl.BlockSpec((C, 4 * HW), lambda n: (0, n)),
                  pl.BlockSpec((C, 128), lambda n: (0, 0)),
                  pl.BlockSpec((C, 1), lambda n: (0, 0)),
                  pl.BlockSpec((C, 1), lambda n: (0, 0))],
        out_specs=pl.BlockSpec((C, 4 * HW), lambda n: (0, n)),
        compiler_params=pltpu.CompilerParams(
            dimension_semantics=("parallel",)),
    )(y2, stats, g, bt)

    # parity-blocked (c, n, ph, pw, i, j) -> NCHW with oh = 2*i+ph, ow = 2*j+pw
    out = out.reshape(C, N, 2, 2, H, W)
    out = jnp.transpose(out, (1, 0, 4, 2, 5, 3)).reshape(N, C, H2, W2)
    return out


def reference(x, wT, bT, wC, bC, gamma, beta):
    """Pure-XLA NCHW reference.  Conv operands are rounded to bf16 exactly as the
    kernel's MXU matmuls do (products exact, f32 accumulation), so kernel and
    reference differ only by f32 accumulation order."""
    rnd = lambda a: a.astype(jnp.bfloat16).astype(jnp.float32)
    w_eq = jnp.transpose(wT[:, :, ::-1, ::-1], (1, 0, 2, 3))        # (Cout,Cin,4,4)
    y1 = lax.conv_general_dilated(
        rnd(x), rnd(w_eq), window_strides=(1, 1), padding=((2, 2), (2, 2)),
        lhs_dilation=(2, 2), dimension_numbers=('NCHW', 'OIHW', 'NCHW'),
        precision=lax.Precision.HIGHEST)
    y1 = y1 + bT[None, :, None, None]
    y2 = lax.conv_general_dilated(
        rnd(y1), rnd(wC), window_strides=(1, 1), padding=((1, 1), (1, 1)),
        dimension_numbers=('NCHW', 'OIHW', 'NCHW'),
        precision=lax.Precision.HIGHEST)
    y2 = y2 + bC[None, :, None, None]
    mean = jnp.mean(y2, axis=(0, 2, 3), keepdims=True)
    var = jnp.mean((y2 - mean) ** 2, axis=(0, 2, 3), keepdims=True)
    y = (y2 - mean) * lax.rsqrt(var + 1e-5)
    y = y * gamma[None, :, None, None] + beta[None, :, None, None]
    return jnp.maximum(y, 0.0)


if __name__ == "__main__":
    N, C, H, W = 2, 8, 16, 16  # small test shape for Upsample_n_Concat_T1_img(filters=8)

    key = jax.random.PRNGKey(0)
    k = jax.random.split(key, 7)
    x = jax.random.normal(k[0], (N, C, H, W), jnp.float32)
    wT = 0.1 * jax.random.normal(k[1], (C, C, 4, 4), jnp.float32)   # ConvTranspose2d.weight
    bT = 0.1 * jax.random.normal(k[2], (C,), jnp.float32)           # ConvTranspose2d.bias
    wC = 0.1 * jax.random.normal(k[3], (C, C, 3, 3), jnp.float32)   # Conv2d.weight
    bC = 0.1 * jax.random.normal(k[4], (C,), jnp.float32)           # Conv2d.bias
    gamma = 1.0 + 0.1 * jax.random.normal(k[5], (C,), jnp.float32)  # BatchNorm2d.weight
    beta = 0.1 * jax.random.normal(k[6], (C,), jnp.float32)         # BatchNorm2d.bias

    out = jax.block_until_ready(
        upsample_n_concat_t1(x, wT, bT, wC, bC, gamma, beta))
    ref = jax.block_until_ready(reference(x, wT, bT, wC, bC, gamma, beta))

    assert out.shape == (N, C, 2 * H, 2 * W), out.shape
    # Kernel and reference share identical bf16 operand rounding; the residual
    # difference is f32 accumulation order plus occasional 1-ulp bf16
    # double-rounding of the intermediate activation feeding the 3x3 conv.
    np.testing.assert_allclose(np.asarray(out), np.asarray(ref),
                               rtol=5e-3, atol=5e-3)
    print("KERNEL_OK")
</pallas_src>

<mosaic_0001>
module attributes {stable_mosaic.version = 11 : i64} {
  func.func @_conv_kernel(%arg0: i32, %arg1: memref<128x256xbf16, #tpu.memory_space<vmem>>, %arg2: memref<32x32xbf16, #tpu.memory_space<vmem>>, %arg3: memref<8x1xf32, #tpu.memory_space<vmem>>, %arg4: memref<8x72xbf16, #tpu.memory_space<vmem>>, %arg5: memref<8x1024xf32, #tpu.memory_space<vmem>>, %arg6: memref<8x128xf32, #tpu.memory_space<vmem>>, %arg7: memref<8x2048xbf16, #tpu.memory_space<vmem>>, %arg8: memref<72x256xbf16, #tpu.memory_space<vmem>>) attributes {dimension_semantics = [#tpu.dimension_semantics<arbitrary>], iteration_bounds = array<i64: 2>, scalar_prefetch = 0 : i64, scratch_operands = 2 : i64, tpu.core_type = #tpu.core_type<tc>, window_params = [{transform_indices = @transform_0, window_bounds = array<i64: 128, 256>}, {pipeline_mode = #tpu.pipeline_mode<synchronous>, transform_indices = @transform_1, window_bounds = array<i64: 32, 32>}, {pipeline_mode = #tpu.pipeline_mode<synchronous>, transform_indices = @transform_2, window_bounds = array<i64: 8, 1>}, {pipeline_mode = #tpu.pipeline_mode<synchronous>, transform_indices = @transform_3, window_bounds = array<i64: 8, 72>}, {transform_indices = @transform_4, window_bounds = array<i64: 8, 1024>}, {pipeline_mode = #tpu.pipeline_mode<synchronous>, transform_indices = @transform_5, window_bounds = array<i64: 8, 128>}]} {
    %c0_i32 = arith.constant 0 : i32
    %0 = arith.cmpi eq, %arg0, %c0_i32 : i32
    %1 = arith.extui %0 : i1 to i32
    %c0_i32_0 = arith.constant 0 : i32
    %2 = arith.cmpi ne, %1, %c0_i32_0 : i32
    scf.if %2 {
      %cst_210 = arith.constant 0.000000e+00 : bf16
      %237 = vector.broadcast %cst_210 : bf16 to vector<8x2048xbf16>
      %c0_211 = arith.constant 0 : index
      %c0_212 = arith.constant 0 : index
      %238 = vector.load %arg7[%c0_211, %c0_212] : memref<8x2048xbf16, #tpu.memory_space<vmem>>, vector<8x2048xbf16>
      tpu.vector_store %arg7[%c0_211, %c0_212], %237 {strides = array<i32>} : memref<8x2048xbf16, #tpu.memory_space<vmem>>, vector<8x2048xbf16>,
      %cst_213 = arith.constant 0.000000e+00 : f32
      %239 = vector.broadcast %cst_213 : f32 to vector<8x128xf32>
      %c0_214 = arith.constant 0 : index
      %c0_215 = arith.constant 0 : index
      %240 = vector.load %arg6[%c0_214, %c0_215] : memref<8x128xf32, #tpu.memory_space<vmem>>, vector<8x128xf32>
      tpu.vector_store %arg6[%c0_214, %c0_215], %239 {strides = array<i32>} : memref<8x128xf32, #tpu.memory_space<vmem>>, vector<8x128xf32>,
    } else {
    }
    %c0 = arith.constant 0 : index
    %c0_1 = arith.constant 0 : index
    %3 = vector.load %arg1[%c0, %c0_1] : memref<128x256xbf16, #tpu.memory_space<vmem>>, vector<32x256xbf16>
    %c0_2 = arith.constant 0 : index
    %c0_3 = arith.constant 0 : index
    %4 = vector.load %arg2[%c0_2, %c0_3] : memref<32x32xbf16, #tpu.memory_space<vmem>>, vector<8x32xbf16>
    %cst = arith.constant dense<0.000000e+00> : vector<8x256xf32>
    %5 = tpu.matmul %4, %3, %cst {dimension_numbers = #tpu.dot_dimension_numbers<[1], [0], [0], [1], [0, 0, 1, 1], [], []>} : vector<8x32xbf16>, vector<32x256xbf16>, vector<8x256xf32> -> vector<8x256xf32>
    %c0_4 = arith.constant 0 : index
    %c0_5 = arith.constant 0 : index
    %6 = vector.load %arg3[%c0_4, %c0_5] : memref<8x1xf32, #tpu.memory_space<vmem>>, vector<8x1xf32>
    %7 = vector.broadcast %6 : vector<8x1xf32> to vector<8x256xf32>
    %8 = arith.addf %5, %7 : vector<8x256xf32>
    %9 = arith.truncf %8 : vector<8x256xf32> to vector<8x256xbf16>
    %c0_6 = arith.constant 0 : index
    %c128 = arith.constant 128 : index
    %10 = vector.load %arg7[%c0_6, %c128] : memref<8x2048xbf16, #tpu.memory_space<vmem>>, vector<8x256xbf16>
    tpu.vector_store %arg7[%c0_6, %c128], %9 {strides = array<i32>} : memref<8x2048xbf16, #tpu.memory_space<vmem>>, vector<8x256xbf16>,
    %c32 = arith.constant 32 : index
    %c0_7 = arith.constant 0 : index
    %11 = vector.load %arg1[%c32, %c0_7] : memref<128x256xbf16, #tpu.memory_space<vmem>>, vector<32x256xbf16>
    %c8 = arith.constant 8 : index
    %c0_8 = arith.constant 0 : index
    %12 = vector.load %arg2[%c8, %c0_8] : memref<32x32xbf16, #tpu.memory_space<vmem>>, vector<8x32xbf16>
    %cst_9 = arith.constant dense<0.000000e+00> : vector<8x256xf32>
    %13 = tpu.matmul %12, %11, %cst_9 {dimension_numbers = #tpu.dot_dimension_numbers<[1], [0], [0], [1], [0, 0, 1, 1], [], []>} : vector<8x32xbf16>, vector<32x256xbf16>, vector<8x256xf32> -> vector<8x256xf32>
    %c0_10 = arith.constant 0 : index
    %c0_11 = arith.constant 0 : index
    %14 = vector.load %arg3[%c0_10, %c0_11] : memref<8x1xf32, #tpu.memory_space<vmem>>, vector<8x1xf32>
    %15 = vector.broadcast %14 : vector<8x1xf32> to vector<8x256xf32>
    %16 = arith.addf %13, %15 : vector<8x256xf32>
    %17 = arith.truncf %16 : vector<8x256xf32> to vector<8x256xbf16>
    %c0_12 = arith.constant 0 : index
    %c640 = arith.constant 640 : index
    %18 = vector.load %arg7[%c0_12, %c640] : memref<8x2048xbf16, #tpu.memory_space<vmem>>, vector<8x256xbf16>
    tpu.vector_store %arg7[%c0_12, %c640], %17 {strides = array<i32>} : memref<8x2048xbf16, #tpu.memory_space<vmem>>, vector<8x256xbf16>,
    %c64 = arith.constant 64 : index
    %c0_13 = arith.constant 0 : index
    %19 = vector.load %arg1[%c64, %c0_13] : memref<128x256xbf16, #tpu.memory_space<vmem>>, vector<32x256xbf16>
    %c16 = arith.constant 16 : index
    %c0_14 = arith.constant 0 : index
    %20 = vector.load %arg2[%c16, %c0_14] : memref<32x32xbf16, #tpu.memory_space<vmem>>, vector<8x32xbf16>
    %cst_15 = arith.constant dense<0.000000e+00> : vector<8x256xf32>
    %21 = tpu.matmul %20, %19, %cst_15 {dimension_numbers = #tpu.dot_dimension_numbers<[1], [0], [0], [1], [0, 0, 1, 1], [], []>} : vector<8x32xbf16>, vector<32x256xbf16>, vector<8x256xf32> -> vector<8x256xf32>
    %c0_16 = arith.constant 0 : index
    %c0_17 = arith.constant 0 : index
    %22 = vector.load %arg3[%c0_16, %c0_17] : memref<8x1xf32, #tpu.memory_space<vmem>>, vector<8x1xf32>
    %23 = vector.broadcast %22 : vector<8x1xf32> to vector<8x256xf32>
    %24 = arith.addf %21, %23 : vector<8x256xf32>
    %25 = arith.truncf %24 : vector<8x256xf32> to vector<8x256xbf16>
    %c0_18 = arith.constant 0 : index
    %c1152 = arith.constant 1152 : index
    %26 = vector.load %arg7[%c0_18, %c1152] : memref<8x2048xbf16, #tpu.memory_space<vmem>>, vector<8x256xbf16>
    tpu.vector_store %arg7[%c0_18, %c1152], %25 {strides = array<i32>} : memref<8x2048xbf16, #tpu.memory_space<vmem>>, vector<8x256xbf16>,
    %c96 = arith.constant 96 : index
    %c0_19 = arith.constant 0 : index
    %27 = vector.load %arg1[%c96, %c0_19] : memref<128x256xbf16, #tpu.memory_space<vmem>>, vector<32x256xbf16>
    %c24 = arith.constant 24 : index
    %c0_20 = arith.constant 0 : index
    %28 = vector.load %arg2[%c24, %c0_20] : memref<32x32xbf16, #tpu.memory_space<vmem>>, vector<8x32xbf16>
    %cst_21 = arith.constant dense<0.000000e+00> : vector<8x256xf32>
    %29 = tpu.matmul %28, %27, %cst_21 {dimension_numbers = #tpu.dot_dimension_numbers<[1], [0], [0], [1], [0, 0, 1, 1], [], []>} : vector<8x32xbf16>, vector<32x256xbf16>, vector<8x256xf32> -> vector<8x256xf32>
    %c0_22 = arith.constant 0 : index
    %c0_23 = arith.constant 0 : index
    %30 = vector.load %arg3[%c0_22, %c0_23] : memref<8x1xf32, #tpu.memory_space<vmem>>, vector<8x1xf32>
    %31 = vector.broadcast %30 : vector<8x1xf32> to vector<8x256xf32>
    %32 = arith.addf %29, %31 : vector<8x256xf32>
    %33 = arith.truncf %32 : vector<8x256xf32> to vector<8x256xbf16>
    %c0_24 = arith.constant 0 : index
    %c1664 = arith.constant 1664 : index
    %34 = vector.load %arg7[%c0_24, %c1664] : memref<8x2048xbf16, #tpu.memory_space<vmem>>, vector<8x256xbf16>
    tpu.vector_store %arg7[%c0_24, %c1664], %33 {strides = array<i32>} : memref<8x2048xbf16, #tpu.memory_space<vmem>>, vector<8x256xbf16>,
    %35 = tpu.iota {dimensions = array<i32: 1>} : vector<1x256xi32>
    %c15_i32 = arith.constant 15 : i32
    %36 = vector.broadcast %c15_i32 : i32 to vector<1x256xi32>
    %37 = arith.andi %35, %36 : vector<1x256xi32>
    %c0_i32_25 = arith.constant 0 : i32
    %38 = vector.broadcast %c0_i32_25 : i32 to vector<1x256xi32>
    %39 = arith.cmpi sgt, %37, %38 : vector<1x256xi32>
    %c15_i32_26 = arith.constant 15 : i32
    %40 = vector.broadcast %c15_i32_26 : i32 to vector<1x256xi32>
    %41 = arith.cmpi slt, %37, %40 : vector<1x256xi32>
    %cst_27 = arith.constant 0.000000e+00 : f32
    %42 = vector.broadcast %cst_27 : f32 to vector<8x1xf32>
    %cst_28 = arith.constant 0.000000e+00 : f32
    %43 = vector.broadcast %cst_28 : f32 to vector<8x1xf32>
    %c0_29 = arith.constant 0 : index
    %c1647 = arith.constant 1647 : index
    %44 = vector.load %arg7[%c0_29, %c1647] : memref<8x2048xbf16, #tpu.memory_space<vmem>>, vector<8x256xbf16>
    %c0_i32_30 = arith.constant 0 : i32
    %45 = arith.sitofp %c0_i32_30 : i32 to bf16
    %46 = vector.shape_cast %39 : vector<1x256xi1> to vector<1x256xi1>
    %47 = vector.broadcast %46 : vector<1x256xi1> to vector<8x256xi1>
    %48 = vector.broadcast %45 : bf16 to vector<8x256xbf16>
    %49 = arith.select %47, %44, %48 : vector<8x256xi1>, vector<8x256xbf16>
    %c0_31 = arith.constant 0 : index
    %c0_32 = arith.constant 0 : index
    %50 = vector.load %arg8[%c0_31, %c0_32] : memref<72x256xbf16, #tpu.memory_space<vmem>>, vector<8x256xbf16>
    tpu.vector_store %arg8[%c0_31, %c0_32], %49 {strides = array<i32>} : memref<72x256xbf16, #tpu.memory_space<vmem>>, vector<8x256xbf16>,
    %c0_33 = arith.constant 0 : index
    %c1136 = arith.constant 1136 : index
    %51 = vector.load %arg7[%c0_33, %c1136] : memref<8x2048xbf16, #tpu.memory_space<vmem>>, vector<8x256xbf16>
    %c8_34 = arith.constant 8 : index
    %c0_35 = arith.constant 0 : index
    %52 = vector.load %arg8[%c8_34, %c0_35] : memref<72x256xbf16, #tpu.memory_space<vmem>>, vector<8x256xbf16>
    tpu.vector_store %arg8[%c8_34, %c0_35], %51 {strides = array<i32>} : memref<72x256xbf16, #tpu.memory_space<vmem>>, vector<8x256xbf16>,
    %c0_36 = arith.constant 0 : index
    %c1648 = arith.constant 1648 : index
    %53 = vector.load %arg7[%c0_36, %c1648] : memref<8x2048xbf16, #tpu.memory_space<vmem>>, vector<8x256xbf16>
    %c16_37 = arith.constant 16 : index
    %c0_38 = arith.constant 0 : index
    %54 = vector.load %arg8[%c16_37, %c0_38] : memref<72x256xbf16, #tpu.memory_space<vmem>>, vector<8x256xbf16>
    tpu.vector_store %arg8[%c16_37, %c0_38], %53 {strides = array<i32>} : memref<72x256xbf16, #tpu.memory_space<vmem>>, vector<8x256xbf16>,
    %c0_39 = arith.constant 0 : index
    %c639 = arith.constant 639 : index
    %55 = vector.load %arg7[%c0_39, %c639] : memref<8x2048xbf16, #tpu.memory_space<vmem>>, vector<8x256xbf16>
    %c0_i32_40 = arith.constant 0 : i32
    %56 = arith.sitofp %c0_i32_40 : i32 to bf16
    %57 = vector.shape_cast %39 : vector<1x256xi1> to vector<1x256xi1>
    %58 = vector.broadcast %57 : vector<1x256xi1> to vector<8x256xi1>
    %59 = vector.broadcast %56 : bf16 to vector<8x256xbf16>
    %60 = arith.select %58, %55, %59 : vector<8x256xi1>, vector<8x256xbf16>
    %c24_41 = arith.constant 24 : index
    %c0_42 = arith.constant 0 : index
    %61 = vector.load %arg8[%c24_41, %c0_42] : memref<72x256xbf16, #tpu.memory_space<vmem>>, vector<8x256xbf16>
    tpu.vector_store %arg8[%c24_41, %c0_42], %60 {strides = array<i32>} : memref<72x256xbf16, #tpu.memory_space<vmem>>, vector<8x256xbf16>,
    %c0_43 = arith.constant 0 : index
    %c128_44 = arith.constant 128 : index
    %62 = vector.load %arg7[%c0_43, %c128_44] : memref<8x2048xbf16, #tpu.memory_space<vmem>>, vector<8x256xbf16>
    %c32_45 = arith.constant 32 : index
    %c0_46 = arith.constant 0 : index
    %63 = vector.load %arg8[%c32_45, %c0_46] : memref<72x256xbf16, #tpu.memory_space<vmem>>, vector<8x256xbf16>
    tpu.vector_store %arg8[%c32_45, %c0_46], %62 {strides = array<i32>} : memref<72x256xbf16, #tpu.memory_space<vmem>>, vector<8x256xbf16>,
    %c0_47 = arith.constant 0 : index
    %c640_48 = arith.constant 640 : index
    %64 = vector.load %arg7[%c0_47, %c640_48] : memref<8x2048xbf16, #tpu.memory_space<vmem>>, vector<8x256xbf16>
    %c40 = arith.constant 40 : index
    %c0_49 = arith.constant 0 : index
    %65 = vector.load %arg8[%c40, %c0_49] : memref<72x256xbf16, #tpu.memory_space<vmem>>, vector<8x256xbf16>
    tpu.vector_store %arg8[%c40, %c0_49], %64 {strides = array<i32>} : memref<72x256xbf16, #tpu.memory_space<vmem>>, vector<8x256xbf16>,
    %c0_50 = arith.constant 0 : index
    %c1663 = arith.constant 1663 : index
    %66 = vector.load %arg7[%c0_50, %c1663] : memref<8x2048xbf16, #tpu.memory_space<vmem>>, vector<8x256xbf16>
    %c0_i32_51 = arith.constant 0 : i32
    %67 = arith.sitofp %c0_i32_51 : i32 to bf16
    %68 = vector.shape_cast %39 : vector<1x256xi1> to vector<1x256xi1>
    %69 = vector.broadcast %68 : vector<1x256xi1> to vector<8x256xi1>
    %70 = vector.broadcast %67 : bf16 to vector<8x256xbf16>
    %71 = arith.select %69, %66, %70 : vector<8x256xi1>, vector<8x256xbf16>
    %c48 = arith.constant 48 : index
    %c0_52 = arith.constant 0 : index
    %72 = vector.load %arg8[%c48, %c0_52] : memref<72x256xbf16, #tpu.memory_space<vmem>>, vector<8x256xbf16>
    tpu.vector_store %arg8[%c48, %c0_52], %71 {strides = array<i32>} : memref<72x256xbf16, #tpu.memory_space<vmem>>, vector<8x256xbf16>,
    %c0_53 = arith.constant 0 : index
    %c1152_54 = arith.constant 1152 : index
    %73 = vector.load %arg7[%c0_53, %c1152_54] : memref<8x2048xbf16, #tpu.memory_space<vmem>>, vector<8x256xbf16>
    %c56 = arith.constant 56 : index
    %c0_55 = arith.constant 0 : index
    %74 = vector.load %arg8[%c56, %c0_55] : memref<72x256xbf16, #tpu.memory_space<vmem>>, vector<8x256xbf16>
    tpu.vector_store %arg8[%c56, %c0_55], %73 {strides = array<i32>} : memref<72x256xbf16, #tpu.memory_space<vmem>>, vector<8x256xbf16>,
    %c0_56 = arith.constant 0 : index
    %c1664_57 = arith.constant 1664 : index
    %75 = vector.load %arg7[%c0_56, %c1664_57] : memref<8x2048xbf16, #tpu.memory_space<vmem>>, vector<8x256xbf16>
    %c64_58 = arith.constant 64 : index
    %c0_59 = arith.constant 0 : index
    %76 = vector.load %arg8[%c64_58, %c0_59] : memref<72x256xbf16, #tpu.memory_space<vmem>>, vector<8x256xbf16>
    tpu.vector_store %arg8[%c64_58, %c0_59], %75 {strides = array<i32>} : memref<72x256xbf16, #tpu.memory_space<vmem>>, vector<8x256xbf16>,
    %c0_60 = arith.constant 0 : index
    %c0_61 = arith.constant 0 : index
    %77 = vector.load %arg4[%c0_60, %c0_61] : memref<8x72xbf16, #tpu.memory_space<vmem>>, vector<8x72xbf16>
    %c0_62 = arith.constant 0 : index
    %c0_63 = arith.constant 0 : index
    %78 = vector.load %arg8[%c0_62, %c0_63] : memref<72x256xbf16, #tpu.memory_space<vmem>>, vector<72x256xbf16>
    %cst_64 = arith.constant dense<0.000000e+00> : vector<8x256xf32>
    %79 = tpu.matmul %77, %78, %cst_64 {dimension_numbers = #tpu.dot_dimension_numbers<[1], [0], [0], [1], [0, 0, 1, 1], [], []>} : vector<8x72xbf16>, vector<72x256xbf16>, vector<8x256xf32> -> vector<8x256xf32>
    %c0_65 = arith.constant 0 : index
    %c0_66 = arith.constant 0 : index
    %80 = vector.load %arg5[%c0_65, %c0_66] : memref<8x1024xf32, #tpu.memory_space<vmem>>, vector<8x256xf32>
    tpu.vector_store %arg5[%c0_65, %c0_66], %79 {strides = array<i32>} : memref<8x1024xf32, #tpu.memory_space<vmem>>, vector<8x256xf32>,
    %cst_67 = arith.constant dense<0.000000e+00> : vector<8xf32>
    %81 = vector.multi_reduction <add>, %79, %cst_67 [1] : vector<8x256xf32> to vector<8xf32>
    %82 = vector.shape_cast %81 : vector<8xf32> to vector<8x1xf32>
    %83 = arith.addf %42, %82 : vector<8x1xf32>
    %84 = arith.mulf %79, %79 : vector<8x256xf32>
    %cst_68 = arith.constant dense<0.000000e+00> : vector<8xf32>
    %85 = vector.multi_reduction <add>, %84, %cst_68 [1] : vector<8x256xf32> to vector<8xf32>
    %86 = vector.shape_cast %85 : vector<8xf32> to vector<8x1xf32>
    %87 = arith.addf %43, %86 : vector<8x1xf32>
    %c0_69 = arith.constant 0 : index
    %c1136_70 = arith.constant 1136 : index
    %88 = vector.load %arg7[%c0_69, %c1136_70] : memref<8x2048xbf16, #tpu.memory_space<vmem>>, vector<8x256xbf16>
    %c0_71 = arith.constant 0 : index
    %c0_72 = arith.constant 0 : index
    %89 = vector.load %arg8[%c0_71, %c0_72] : memref<72x256xbf16, #tpu.memory_space<vmem>>, vector<8x256xbf16>
    tpu.vector_store %arg8[%c0_71, %c0_72], %88 {strides = array<i32>} : memref<72x256xbf16, #tpu.memory_space<vmem>>, vector<8x256xbf16>,
    %c0_73 = arith.constant 0 : index
    %c1648_74 = arith.constant 1648 : index
    %90 = vector.load %arg7[%c0_73, %c1648_74] : memref<8x2048xbf16, #tpu.memory_space<vmem>>, vector<8x256xbf16>
    %c8_75 = arith.constant 8 : index
    %c0_76 = arith.constant 0 : index
    %91 = vector.load %arg8[%c8_75, %c0_76] : memref<72x256xbf16, #tpu.memory_space<vmem>>, vector<8x256xbf16>
    tpu.vector_store %arg8[%c8_75, %c0_76], %90 {strides = array<i32>} : memref<72x256xbf16, #tpu.memory_space<vmem>>, vector<8x256xbf16>,
    %c0_77 = arith.constant 0 : index
    %c1137 = arith.constant 1137 : index
    %92 = vector.load %arg7[%c0_77, %c1137] : memref<8x2048xbf16, #tpu.memory_space<vmem>>, vector<8x256xbf16>
    %c0_i32_78 = arith.constant 0 : i32
    %93 = arith.sitofp %c0_i32_78 : i32 to bf16
    %94 = vector.shape_cast %41 : vector<1x256xi1> to vector<1x256xi1>
    %95 = vector.broadcast %94 : vector<1x256xi1> to vector<8x256xi1>
    %96 = vector.broadcast %93 : bf16 to vector<8x256xbf16>
    %97 = arith.select %95, %92, %96 : vector<8x256xi1>, vector<8x256xbf16>
    %c16_79 = arith.constant 16 : index
    %c0_80 = arith.constant 0 : index
    %98 = vector.load %arg8[%c16_79, %c0_80] : memref<72x256xbf16, #tpu.memory_space<vmem>>, vector<8x256xbf16>
    tpu.vector_store %arg8[%c16_79, %c0_80], %97 {strides = array<i32>} : memref<72x256xbf16, #tpu.memory_space<vmem>>, vector<8x256xbf16>,
    %c0_81 = arith.constant 0 : index
    %c128_82 = arith.constant 128 : index
    %99 = vector.load %arg7[%c0_81, %c128_82] : memref<8x2048xbf16, #tpu.memory_space<vmem>>, vector<8x256xbf16>
    %c24_83 = arith.constant 24 : index
    %c0_84 = arith.constant 0 : index
    %100 = vector.load %arg8[%c24_83, %c0_84] : memref<72x256xbf16, #tpu.memory_space<vmem>>, vector<8x256xbf16>
    tpu.vector_store %arg8[%c24_83, %c0_84], %99 {strides = array<i32>} : memref<72x256xbf16, #tpu.memory_space<vmem>>, vector<8x256xbf16>,
    %c0_85 = arith.constant 0 : index
    %c640_86 = arith.constant 640 : index
    %101 = vector.load %arg7[%c0_85, %c640_86] : memref<8x2048xbf16, #tpu.memory_space<vmem>>, vector<8x256xbf16>
    %c32_87 = arith.constant 32 : index
    %c0_88 = arith.constant 0 : index
    %102 = vector.load %arg8[%c32_87, %c0_88] : memref<72x256xbf16, #tpu.memory_space<vmem>>, vector<8x256xbf16>
    tpu.vector_store %arg8[%c32_87, %c0_88], %101 {strides = array<i32>} : memref<72x256xbf16, #tpu.memory_space<vmem>>, vector<8x256xbf16>,
    %c0_89 = arith.constant 0 : index
    %c129 = arith.constant 129 : index
    %103 = vector.load %arg7[%c0_89, %c129] : memref<8x2048xbf16, #tpu.memory_space<vmem>>, vector<8x256xbf16>
    %c0_i32_90 = arith.constant 0 : i32
    %104 = arith.sitofp %c0_i32_90 : i32 to bf16
    %105 = vector.shape_cast %41 : vector<1x256xi1> to vector<1x256xi1>
    %106 = vector.broadcast %105 : vector<1x256xi1> to vector<8x256xi1>
    %107 = vector.broadcast %104 : bf16 to vector<8x256xbf16>
    %108 = arith.select %106, %103, %107 : vector<8x256xi1>, vector<8x256xbf16>
    %c40_91 = arith.constant 40 : index
    %c0_92 = arith.constant 0 : index
    %109 = vector.load %arg8[%c40_91, %c0_92] : memref<72x256xbf16, #tpu.memory_space<vmem>>, vector<8x256xbf16>
    tpu.vector_store %arg8[%c40_91, %c0_92], %108 {strides = array<i32>} : memref<72x256xbf16, #tpu.memory_space<vmem>>, vector<8x256xbf16>,
    %c0_93 = arith.constant 0 : index
    %c1152_94 = arith.constant 1152 : index
    %110 = vector.load %arg7[%c0_93, %c1152_94] : memref<8x2048xbf16, #tpu.memory_space<vmem>>, vector<8x256xbf16>
    %c48_95 = arith.constant 48 : index
    %c0_96 = arith.constant 0 : index
    %111 = vector.load %arg8[%c48_95, %c0_96] : memref<72x256xbf16, #tpu.memory_space<vmem>>, vector<8x256xbf16>
    tpu.vector_store %arg8[%c48_95, %c0_96], %110 {strides = array<i32>} : memref<72x256xbf16, #tpu.memory_space<vmem>>, vector<8x256xbf16>,
    %c0_97 = arith.constant 0 : index
    %c1664_98 = arith.constant 1664 : index
    %112 = vector.load %arg7[%c0_97, %c1664_98] : memref<8x2048xbf16, #tpu.memory_space<vmem>>, vector<8x256xbf16>
    %c56_99 = arith.constant 56 : index
    %c0_100 = arith.constant 0 : index
    %113 = vector.load %arg8[%c56_99, %c0_100] : memref<72x256xbf16, #tpu.memory_space<vmem>>, vector<8x256xbf16>
    tpu.vector_store %arg8[%c56_99, %c0_100], %112 {strides = array<i32>} : memref<72x256xbf16, #tpu.memory_space<vmem>>, vector<8x256xbf16>,
    %c0_101 = arith.constant 0 : index
    %c1153 = arith.constant 1153 : index
    %114 = vector.load %arg7[%c0_101, %c1153] : memref<8x2048xbf16, #tpu.memory_space<vmem>>, vector<8x256xbf16>
    %c0_i32_102 = arith.constant 0 : i32
    %115 = arith.sitofp %c0_i32_102 : i32 to bf16
    %116 = vector.shape_cast %41 : vector<1x256xi1> to vector<1x256xi1>
    %117 = vector.broadcast %116 : vector<1x256xi1> to vector<8x256xi1>
    %118 = vector.broadcast %115 : bf16 to vector<8x256xbf16>
    %119 = arith.select %117, %114, %118 : vector<8x256xi1>, vector<8x256xbf16>
    %c64_103 = arith.constant 64 : index
    %c0_104 = arith.constant 0 : index
    %120 = vector.load %arg8[%c64_103, %c0_104] : memref<72x256xbf16, #tpu.memory_space<vmem>>, vector<8x256xbf16>
    tpu.vector_store %arg8[%c64_103, %c0_104], %119 {strides = array<i32>} : memref<72x256xbf16, #tpu.memory_space<vmem>>, vector<8x256xbf16>,
    %c0_105 = arith.constant 0 : index
    %c0_106 = arith.constant 0 : index
    %121 = vector.load %arg4[%c0_105, %c0_106] : memref<8x72xbf16, #tpu.memory_space<vmem>>, vector<8x72xbf16>
    %c0_107 = arith.constant 0 : index
    %c0_108 = arith.constant 0 : index
    %122 = vector.load %arg8[%c0_107, %c0_108] : memref<72x256xbf16, #tpu.memory_space<vmem>>, vector<72x256xbf16>
    %cst_109 = arith.constant dense<0.000000e+00> : vector<8x256xf32>
    %123 = tpu.matmul %121, %122, %cst_109 {dimension_numbers = #tpu.dot_dimension_numbers<[1], [0], [0], [1], [0, 0, 1, 1], [], []>} : vector<8x72xbf16>, vector<72x256xbf16>, vector<8x256xf32> -> vector<8x256xf32>
    %c0_110 = arith.constant 0 : index
    %c256 = arith.constant 256 : index
    %124 = vector.load %arg5[%c0_110, %c256] : memref<8x1024xf32, #tpu.memory_space<vmem>>, vector<8x256xf32>
    tpu.vector_store %arg5[%c0_110, %c256], %123 {strides = array<i32>} : memref<8x1024xf32, #tpu.memory_space<vmem>>, vector<8x256xf32>,
    %cst_111 = arith.constant dense<0.000000e+00> : vector<8xf32>
    %125 = vector.multi_reduction <add>, %123, %cst_111 [1] : vector<8x256xf32> to vector<8xf32>
    %126 = vector.shape_cast %125 : vector<8xf32> to vector<8x1xf32>
    %127 = arith.addf %83, %126 : vector<8x1xf32>
    %128 = arith.mulf %123, %123 : vector<8x256xf32>
    %cst_112 = arith.constant dense<0.000000e+00> : vector<8xf32>
    %129 = vector.multi_reduction <add>, %128, %cst_112 [1] : vector<8x256xf32> to vector<8xf32>
    %130 = vector.shape_cast %129 : vector<8xf32> to vector<8x1xf32>
    %131 = arith.addf %87, %130 : vector<8x1xf32>
    %c0_113 = arith.constant 0 : index
    %c639_114 = arith.constant 639 : index
    %132 = vector.load %arg7[%c0_113, %c639_114] : memref<8x2048xbf16, #tpu.memory_space<vmem>>, vector<8x256xbf16>
    %c0_i32_115 = arith.constant 0 : i32
    %133 = arith.sitofp %c0_i32_115 : i32 to bf16
    %134 = vector.shape_cast %39 : vector<1x256xi1> to vector<1x256xi1>
    %135 = vector.broadcast %134 : vector<1x256xi1> to vector<8x256xi1>
    %136 = vector.broadcast %133 : bf16 to vector<8x256xbf16>
    %137 = arith.select %135, %132, %136 : vector<8x256xi1>, vector<8x256xbf16>
    %c0_116 = arith.constant 0 : index
    %c0_117 = arith.constant 0 : index
    %138 = vector.load %arg8[%c0_116, %c0_117] : memref<72x256xbf16, #tpu.memory_space<vmem>>, vector<8x256xbf16>
    tpu.vector_store %arg8[%c0_116, %c0_117], %137 {strides = array<i32>} : memref<72x256xbf16, #tpu.memory_space<vmem>>, vector<8x256xbf16>,
    %c0_118 = arith.constant 0 : index
    %c128_119 = arith.constant 128 : index
    %139 = vector.load %arg7[%c0_118, %c128_119] : memref<8x2048xbf16, #tpu.memory_space<vmem>>, vector<8x256xbf16>
    %c8_120 = arith.constant 8 : index
    %c0_121 = arith.constant 0 : index
    %140 = vector.load %arg8[%c8_120, %c0_121] : memref<72x256xbf16, #tpu.memory_space<vmem>>, vector<8x256xbf16>
    tpu.vector_store %arg8[%c8_120, %c0_121], %139 {strides = array<i32>} : memref<72x256xbf16, #tpu.memory_space<vmem>>, vector<8x256xbf16>,
    %c0_122 = arith.constant 0 : index
    %c640_123 = arith.constant 640 : index
    %141 = vector.load %arg7[%c0_122, %c640_123] : memref<8x2048xbf16, #tpu.memory_space<vmem>>, vector<8x256xbf16>
    %c16_124 = arith.constant 16 : index
    %c0_125 = arith.constant 0 : index
    %142 = vector.load %arg8[%c16_124, %c0_125] : memref<72x256xbf16, #tpu.memory_space<vmem>>, vector<8x256xbf16>
    tpu.vector_store %arg8[%c16_124, %c0_125], %141 {strides = array<i32>} : memref<72x256xbf16, #tpu.memory_space<vmem>>, vector<8x256xbf16>,
    %c0_126 = arith.constant 0 : index
    %c1663_127 = arith.constant 1663 : index
    %143 = vector.load %arg7[%c0_126, %c1663_127] : memref<8x2048xbf16, #tpu.memory_space<vmem>>, vector<8x256xbf16>
    %c0_i32_128 = arith.constant 0 : i32
    %144 = arith.sitofp %c0_i32_128 : i32 to bf16
    %145 = vector.shape_cast %39 : vector<1x256xi1> to vector<1x256xi1>
    %146 = vector.broadcast %145 : vector<1x256xi1> to vector<8x256xi1>
    %147 = vector.broadcast %144 : bf16 to vector<8x256xbf16>
    %148 = arith.select %146, %143, %147 : vector<8x256xi1>, vector<8x256xbf16>
    %c24_129 = arith.constant 24 : index
    %c0_130 = arith.constant 0 : index
    %149 = vector.load %arg8[%c24_129, %c0_130] : memref<72x256xbf16, #tpu.memory_space<vmem>>, vector<8x256xbf16>
    tpu.vector_store %arg8[%c24_129, %c0_130], %148 {strides = array<i32>} : memref<72x256xbf16, #tpu.memory_space<vmem>>, vector<8x256xbf16>,
    %c0_131 = arith.constant 0 : index
    %c1152_132 = arith.constant 1152 : index
    %150 = vector.load %arg7[%c0_131, %c1152_132] : memref<8x2048xbf16, #tpu.memory_space<vmem>>, vector<8x256xbf16>
    %c32_133 = arith.constant 32 : index
    %c0_134 = arith.constant 0 : index
    %151 = vector.load %arg8[%c32_133, %c0_134] : memref<72x256xbf16, #tpu.memory_space<vmem>>, vector<8x256xbf16>
    tpu.vector_store %arg8[%c32_133, %c0_134], %150 {strides = array<i32>} : memref<72x256xbf16, #tpu.memory_space<vmem>>, vector<8x256xbf16>,
    %c0_135 = arith.constant 0 : index
    %c1664_136 = arith.constant 1664 : index
    %152 = vector.load %arg7[%c0_135, %c1664_136] : memref<8x2048xbf16, #tpu.memory_space<vmem>>, vector<8x256xbf16>
    %c40_137 = arith.constant 40 : index
    %c0_138 = arith.constant 0 : index
    %153 = vector.load %arg8[%c40_137, %c0_138] : memref<72x256xbf16, #tpu.memory_space<vmem>>, vector<8x256xbf16>
    tpu.vector_store %arg8[%c40_137, %c0_138], %152 {strides = array<i32>} : memref<72x256xbf16, #tpu.memory_space<vmem>>, vector<8x256xbf16>,
    %c0_139 = arith.constant 0 : index
    %c655 = arith.constant 655 : index
    %154 = vector.load %arg7[%c0_139, %c655] : memref<8x2048xbf16, #tpu.memory_space<vmem>>, vector<8x256xbf16>
    %c0_i32_140 = arith.constant 0 : i32
    %155 = arith.sitofp %c0_i32_140 : i32 to bf16
    %156 = vector.shape_cast %39 : vector<1x256xi1> to vector<1x256xi1>
    %157 = vector.broadcast %156 : vector<1x256xi1> to vector<8x256xi1>
    %158 = vector.broadcast %155 : bf16 to vector<8x256xbf16>
    %159 = arith.select %157, %154, %158 : vector<8x256xi1>, vector<8x256xbf16>
    %c48_141 = arith.constant 48 : index
    %c0_142 = arith.constant 0 : index
    %160 = vector.load %arg8[%c48_141, %c0_142] : memref<72x256xbf16, #tpu.memory_space<vmem>>, vector<8x256xbf16>
    tpu.vector_store %arg8[%c48_141, %c0_142], %159 {strides = array<i32>} : memref<72x256xbf16, #tpu.memory_space<vmem>>, vector<8x256xbf16>,
    %c0_143 = arith.constant 0 : index
    %c144 = arith.constant 144 : index
    %161 = vector.load %arg7[%c0_143, %c144] : memref<8x2048xbf16, #tpu.memory_space<vmem>>, vector<8x256xbf16>
    %c56_144 = arith.constant 56 : index
    %c0_145 = arith.constant 0 : index
    %162 = vector.load %arg8[%c56_144, %c0_145] : memref<72x256xbf16, #tpu.memory_space<vmem>>, vector<8x256xbf16>
    tpu.vector_store %arg8[%c56_144, %c0_145], %161 {strides = array<i32>} : memref<72x256xbf16, #tpu.memory_space<vmem>>, vector<8x256xbf16>,
    %c0_146 = arith.constant 0 : index
    %c656 = arith.constant 656 : index
    %163 = vector.load %arg7[%c0_146, %c656] : memref<8x2048xbf16, #tpu.memory_space<vmem>>, vector<8x256xbf16>
    %c64_147 = arith.constant 64 : index
    %c0_148 = arith.constant 0 : index
    %164 = vector.load %arg8[%c64_147, %c0_148] : memref<72x256xbf16, #tpu.memory_space<vmem>>, vector<8x256xbf16>
    tpu.vector_store %arg8[%c64_147, %c0_148], %163 {strides = array<i32>} : memref<72x256xbf16, #tpu.memory_space<vmem>>, vector<8x256xbf16>,
    %c0_149 = arith.constant 0 : index
    %c0_150 = arith.constant 0 : index
    %165 = vector.load %arg4[%c0_149, %c0_150] : memref<8x72xbf16, #tpu.memory_space<vmem>>, vector<8x72xbf16>
    %c0_151 = arith.constant 0 : index
    %c0_152 = arith.constant 0 : index
    %166 = vector.load %arg8[%c0_151, %c0_152] : memref<72x256xbf16, #tpu.memory_space<vmem>>, vector<72x256xbf16>
    %cst_153 = arith.constant dense<0.000000e+00> : vector<8x256xf32>
    %167 = tpu.matmul %165, %166, %cst_153 {dimension_numbers = #tpu.dot_dimension_numbers<[1], [0], [0], [1], [0, 0, 1, 1], [], []>} : vector<8x72xbf16>, vector<72x256xbf16>, vector<8x256xf32> -> vector<8x256xf32>
    %c0_154 = arith.constant 0 : index
    %c512 = arith.constant 512 : index
    %168 = vector.load %arg5[%c0_154, %c512] : memref<8x1024xf32, #tpu.memory_space<vmem>>, vector<8x256xf32>
    tpu.vector_store %arg5[%c0_154, %c512], %167 {strides = array<i32>} : memref<8x1024xf32, #tpu.memory_space<vmem>>, vector<8x256xf32>,
    %cst_155 = arith.constant dense<0.000000e+00> : vector<8xf32>
    %169 = vector.multi_reduction <add>, %167, %cst_155 [1] : vector<8x256xf32> to vector<8xf32>
    %170 = vector.shape_cast %169 : vector<8xf32> to vector<8x1xf32>
    %171 = arith.addf %127, %170 : vector<8x1xf32>
    %172 = arith.mulf %167, %167 : vector<8x256xf32>
    %cst_156 = arith.constant dense<0.000000e+00> : vector<8xf32>
    %173 = vector.multi_reduction <add>, %172, %cst_156 [1] : vector<8x256xf32> to vector<8xf32>
    %174 = vector.shape_cast %173 : vector<8xf32> to vector<8x1xf32>
    %175 = arith.addf %131, %174 : vector<8x1xf32>
    %c0_157 = arith.constant 0 : index
    %c128_158 = arith.constant 128 : index
    %176 = vector.load %arg7[%c0_157, %c128_158] : memref<8x2048xbf16, #tpu.memory_space<vmem>>, vector<8x256xbf16>
    %c0_159 = arith.constant 0 : index
    %c0_160 = arith.constant 0 : index
    %177 = vector.load %arg8[%c0_159, %c0_160] : memref<72x256xbf16, #tpu.memory_space<vmem>>, vector<8x256xbf16>
    tpu.vector_store %arg8[%c0_159, %c0_160], %176 {strides = array<i32>} : memref<72x256xbf16, #tpu.memory_space<vmem>>, vector<8x256xbf16>,
    %c0_161 = arith.constant 0 : index
    %c640_162 = arith.constant 640 : index
    %178 = vector.load %arg7[%c0_161, %c640_162] : memref<8x2048xbf16, #tpu.memory_space<vmem>>, vector<8x256xbf16>
    %c8_163 = arith.constant 8 : index
    %c0_164 = arith.constant 0 : index
    %179 = vector.load %arg8[%c8_163, %c0_164] : memref<72x256xbf16, #tpu.memory_space<vmem>>, vector<8x256xbf16>
    tpu.vector_store %arg8[%c8_163, %c0_164], %178 {strides = array<i32>} : memref<72x256xbf16, #tpu.memory_space<vmem>>, vector<8x256xbf16>,
    %c0_165 = arith.constant 0 : index
    %c129_166 = arith.constant 129 : index
    %180 = vector.load %arg7[%c0_165, %c129_166] : memref<8x2048xbf16, #tpu.memory_space<vmem>>, vector<8x256xbf16>
    %c0_i32_167 = arith.constant 0 : i32
    %181 = arith.sitofp %c0_i32_167 : i32 to bf16
    %182 = vector.shape_cast %41 : vector<1x256xi1> to vector<1x256xi1>
    %183 = vector.broadcast %182 : vector<1x256xi1> to vector<8x256xi1>
    %184 = vector.broadcast %181 : bf16 to vector<8x256xbf16>
    %185 = arith.select %183, %180, %184 : vector<8x256xi1>, vector<8x256xbf16>
    %c16_168 = arith.constant 16 : index
    %c0_169 = arith.constant 0 : index
    %186 = vector.load %arg8[%c16_168, %c0_169] : memref<72x256xbf16, #tpu.memory_space<vmem>>, vector<8x256xbf16>
    tpu.vector_store %arg8[%c16_168, %c0_169], %185 {strides = array<i32>} : memref<72x256xbf16, #tpu.memory_space<vmem>>, vector<8x256xbf16>,
    %c0_170 = arith.constant 0 : index
    %c1152_171 = arith.constant 1152 : index
    %187 = vector.load %arg7[%c0_170, %c1152_171] : memref<8x2048xbf16, #tpu.memory_space<vmem>>, vector<8x256xbf16>
    %c24_172 = arith.constant 24 : index
    %c0_173 = arith.constant 0 : index
    %188 = vector.load %arg8[%c24_172, %c0_173] : memref<72x256xbf16, #tpu.memory_space<vmem>>, vector<8x256xbf16>
    tpu.vector_store %arg8[%c24_172, %c0_173], %187 {strides = array<i32>} : memref<72x256xbf16, #tpu.memory_space<vmem>>, vector<8x256xbf16>,
    %c0_174 = arith.constant 0 : index
    %c1664_175 = arith.constant 1664 : index
    %189 = vector.load %arg7[%c0_174, %c1664_175] : memref<8x2048xbf16, #tpu.memory_space<vmem>>, vector<8x256xbf16>
    %c32_176 = arith.constant 32 : index
    %c0_177 = arith.constant 0 : index
    %190 = vector.load %arg8[%c32_176, %c0_177] : memref<72x256xbf16, #tpu.memory_space<vmem>>, vector<8x256xbf16>
    tpu.vector_store %arg8[%c32_176, %c0_177], %189 {strides = array<i32>} : memref<72x256xbf16, #tpu.memory_space<vmem>>, vector<8x256xbf16>,
    %c0_178 = arith.constant 0 : index
    %c1153_179 = arith.constant 1153 : index
    %191 = vector.load %arg7[%c0_178, %c1153_179] : memref<8x2048xbf16, #tpu.memory_space<vmem>>, vector<8x256xbf16>
    %c0_i32_180 = arith.constant 0 : i32
    %192 = arith.sitofp %c0_i32_180 : i32 to bf16
    %193 = vector.shape_cast %41 : vector<1x256xi1> to vector<1x256xi1>
    %194 = vector.broadcast %193 : vector<1x256xi1> to vector<8x256xi1>
    %195 = vector.broadcast %192 : bf16 to vector<8x256xbf16>
    %196 = arith.select %194, %191, %195 : vector<8x256xi1>, vector<8x256xbf16>
    %c40_181 = arith.constant 40 : index
    %c0_182 = arith.constant 0 : index
    %197 = vector.load %arg8[%c40_181, %c0_182] : memref<72x256xbf16, #tpu.memory_space<vmem>>, vector<8x256xbf16>
    tpu.vector_store %arg8[%c40_181, %c0_182], %196 {strides = array<i32>} : memref<72x256xbf16, #tpu.memory_space<vmem>>, vector<8x256xbf16>,
    %c0_183 = arith.constant 0 : index
    %c144_184 = arith.constant 144 : index
    %198 = vector.load %arg7[%c0_183, %c144_184] : memref<8x2048xbf16, #tpu.memory_space<vmem>>, vector<8x256xbf16>
    %c48_185 = arith.constant 48 : index
    %c0_186 = arith.constant 0 : index
    %199 = vector.load %arg8[%c48_185, %c0_186] : memref<72x256xbf16, #tpu.memory_space<vmem>>, vector<8x256xbf16>
    tpu.vector_store %arg8[%c48_185, %c0_186], %198 {strides = array<i32>} : memref<72x256xbf16, #tpu.memory_space<vmem>>, vector<8x256xbf16>,
    %c0_187 = arith.constant 0 : index
    %c656_188 = arith.constant 656 : index
    %200 = vector.load %arg7[%c0_187, %c656_188] : memref<8x2048xbf16, #tpu.memory_space<vmem>>, vector<8x256xbf16>
    %c56_189 = arith.constant 56 : index
    %c0_190 = arith.constant 0 : index
    %201 = vector.load %arg8[%c56_189, %c0_190] : memref<72x256xbf16, #tpu.memory_space<vmem>>, vector<8x256xbf16>
    tpu.vector_store %arg8[%c56_189, %c0_190], %200 {strides = array<i32>} : memref<72x256xbf16, #tpu.memory_space<vmem>>, vector<8x256xbf16>,
    %c0_191 = arith.constant 0 : index
    %c145 = arith.constant 145 : index
    %202 = vector.load %arg7[%c0_191, %c145] : memref<8x2048xbf16, #tpu.memory_space<vmem>>, vector<8x256xbf16>
    %c0_i32_192 = arith.constant 0 : i32
    %203 = arith.sitofp %c0_i32_192 : i32 to bf16
    %204 = vector.shape_cast %41 : vector<1x256xi1> to vector<1x256xi1>
    %205 = vector.broadcast %204 : vector<1x256xi1> to vector<8x256xi1>
    %206 = vector.broadcast %203 : bf16 to vector<8x256xbf16>
    %207 = arith.select %205, %202, %206 : vector<8x256xi1>, vector<8x256xbf16>
    %c64_193 = arith.constant 64 : index
    %c0_194 = arith.constant 0 : index
    %208 = vector.load %arg8[%c64_193, %c0_194] : memref<72x256xbf16, #tpu.memory_space<vmem>>, vector<8x256xbf16>
    tpu.vector_store %arg8[%c64_193, %c0_194], %207 {strides = array<i32>} : memref<72x256xbf16, #tpu.memory_space<vmem>>, vector<8x256xbf16>,
    %c0_195 = arith.constant 0 : index
    %c0_196 = arith.constant 0 : index
    %209 = vector.load %arg4[%c0_195, %c0_196] : memref<8x72xbf16, #tpu.memory_space<vmem>>, vector<8x72xbf16>
    %c0_197 = arith.constant 0 : index
    %c0_198 = arith.constant 0 : index
    %210 = vector.load %arg8[%c0_197, %c0_198] : memref<72x256xbf16, #tpu.memory_space<vmem>>, vector<72x256xbf16>
    %cst_199 = arith.constant dense<0.000000e+00> : vector<8x256xf32>
    %211 = tpu.matmul %209, %210, %cst_199 {dimension_numbers = #tpu.dot_dimension_numbers<[1], [0], [0], [1], [0, 0, 1, 1], [], []>} : vector<8x72xbf16>, vector<72x256xbf16>, vector<8x256xf32> -> vector<8x256xf32>
    %c0_200 = arith.constant 0 : index
    %c768 = arith.constant 768 : index
    %212 = vector.load %arg5[%c0_200, %c768] : memref<8x1024xf32, #tpu.memory_space<vmem>>, vector<8x256xf32>
    tpu.vector_store %arg5[%c0_200, %c768], %211 {strides = array<i32>} : memref<8x1024xf32, #tpu.memory_space<vmem>>, vector<8x256xf32>,
    %cst_201 = arith.constant dense<0.000000e+00> : vector<8xf32>
    %213 = vector.multi_reduction <add>, %211, %cst_201 [1] : vector<8x256xf32> to vector<8xf32>
    %214 = vector.shape_cast %213 : vector<8xf32> to vector<8x1xf32>
    %215 = arith.addf %171, %214 : vector<8x1xf32>
    %216 = arith.mulf %211, %211 : vector<8x256xf32>
    %cst_202 = arith.constant dense<0.000000e+00> : vector<8xf32>
    %217 = vector.multi_reduction <add>, %216, %cst_202 [1] : vector<8x256xf32> to vector<8xf32>
    %218 = vector.shape_cast %217 : vector<8xf32> to vector<8x1xf32>
    %219 = arith.addf %175, %218 : vector<8x1xf32>
    %220 = tpu.iota {dimensions = array<i32: 1>} : vector<8x128xi32>
    %c0_203 = arith.constant 0 : index
    %c0_204 = arith.constant 0 : index
    %221 = vector.load %arg6[%c0_203, %c0_204] : memref<8x128xf32, #tpu.memory_space<vmem>>, vector<8x128xf32>
    %c0_i32_205 = arith.constant 0 : i32
    %222 = vector.broadcast %c0_i32_205 : i32 to vector<8x128xi32>
    %223 = arith.cmpi eq, %220, %222 : vector<8x128xi32>
    %cst_206 = arith.constant 0.000000e+00 : f32
    %224 = vector.shape_cast %215 : vector<8x1xf32> to vector<8x1xf32>
    %225 = vector.broadcast %224 : vector<8x1xf32> to vector<8x128xf32>
    %226 = vector.broadcast %cst_206 : f32 to vector<8x128xf32>
    %227 = arith.select %223, %225, %226 : vector<8x128xi1>, vector<8x128xf32>
    %c1_i32 = arith.constant 1 : i32
    %228 = vector.broadcast %c1_i32 : i32 to vector<8x128xi32>
    %229 = arith.cmpi eq, %220, %228 : vector<8x128xi32>
    %cst_207 = arith.constant 0.000000e+00 : f32
    %230 = vector.shape_cast %219 : vector<8x1xf32> to vector<8x1xf32>
    %231 = vector.broadcast %230 : vector<8x1xf32> to vector<8x128xf32>
    %232 = vector.broadcast %cst_207 : f32 to vector<8x128xf32>
    %233 = arith.select %229, %231, %232 : vector<8x128xi1>, vector<8x128xf32>
    %234 = arith.addf %227, %233 : vector<8x128xf32>
    %235 = arith.addf %221, %234 : vector<8x128xf32>
    %c0_208 = arith.constant 0 : index
    %c0_209 = arith.constant 0 : index
    %236 = vector.load %arg6[%c0_208, %c0_209] : memref<8x128xf32, #tpu.memory_space<vmem>>, vector<8x128xf32>
    tpu.vector_store %arg6[%c0_208, %c0_209], %235 {strides = array<i32>} : memref<8x128xf32, #tpu.memory_space<vmem>>, vector<8x128xf32>,
    return
  }
  func.func @transform_0(%arg0: i32) -> (i32, i32) {
    %c0_i32 = arith.constant 0 : i32
    %c0_i32_0 = arith.constant 0 : i32
    return %c0_i32, %arg0 : i32, i32
  }
  func.func @transform_1(%arg0: i32) -> (i32, i32) {
    %c0_i32 = arith.constant 0 : i32
    %c0_i32_0 = arith.constant 0 : i32
    %c0_i32_1 = arith.constant 0 : i32
    return %c0_i32, %c0_i32_0 : i32, i32
  }
  func.func @transform_2(%arg0: i32) -> (i32, i32) {
    %c0_i32 = arith.constant 0 : i32
    %c0_i32_0 = arith.constant 0 : i32
    %c0_i32_1 = arith.constant 0 : i32
    return %c0_i32, %c0_i32_0 : i32, i32
  }
  func.func @transform_3(%arg0: i32) -> (i32, i32) {
    %c0_i32 = arith.constant 0 : i32
    %c0_i32_0 = arith.constant 0 : i32
    %c0_i32_1 = arith.constant 0 : i32
    return %c0_i32, %c0_i32_0 : i32, i32
  }
  func.func @transform_4(%arg0: i32) -> (i32, i32) {
    %c0_i32 = arith.constant 0 : i32
    %c0_i32_0 = arith.constant 0 : i32
    return %c0_i32, %arg0 : i32, i32
  }
  func.func @transform_5(%arg0: i32) -> (i32, i32) {
    %c0_i32 = arith.constant 0 : i32
    %c0_i32_0 = arith.constant 0 : i32
    %c0_i32_1 = arith.constant 0 : i32
    return %c0_i32, %c0_i32_0 : i32, i32
  }
}

module attributes {stable_mosaic.version = 11 : i64} {
  func.func @_bn_relu_kernel(%arg0: i32, %arg1: memref<8x1024xf32, #tpu.memory_space<vmem>>, %arg2: memref<8x128xf32, #tpu.memory_space<vmem>>, %arg3: memref<8x1xf32, #tpu.memory_space<vmem>>, %arg4: memref<8x1xf32, #tpu.memory_space<vmem>>, %arg5: memref<8x1024xf32, #tpu.memory_space<vmem>>) attributes {dimension_semantics = [#tpu.dimension_semantics<parallel>], iteration_bounds = array<i64: 2>, scalar_prefetch = 0 : i64, scratch_operands = 0 : i64, tpu.core_type = #tpu.core_type<tc>, window_params = [{transform_indices = @transform_0, window_bounds = array<i64: 8, 1024>}, {pipeline_mode = #tpu.pipeline_mode<synchronous>, transform_indices = @transform_1, window_bounds = array<i64: 8, 128>}, {pipeline_mode = #tpu.pipeline_mode<synchronous>, transform_indices = @transform_2, window_bounds = array<i64: 8, 1>}, {pipeline_mode = #tpu.pipeline_mode<synchronous>, transform_indices = @transform_3, window_bounds = array<i64: 8, 1>}, {transform_indices = @transform_4, window_bounds = array<i64: 8, 1024>}]} {
    %c0 = arith.constant 0 : index
    %c0_0 = arith.constant 0 : index
    %0 = vector.load %arg2[%c0, %c0_0] : memref<8x128xf32, #tpu.memory_space<vmem>>, vector<8x1xf32>
    %c0_1 = arith.constant 0 : index
    %c1 = arith.constant 1 : index
    %1 = vector.load %arg2[%c0_1, %c1] : memref<8x128xf32, #tpu.memory_space<vmem>>, vector<8x1xf32>
    %cst = arith.constant 4.8828125E-4 : f32
    %2 = vector.broadcast %cst : f32 to vector<8x1xf32>
    %3 = arith.mulf %0, %2 : vector<8x1xf32>
    %cst_2 = arith.constant 4.8828125E-4 : f32
    %4 = vector.broadcast %cst_2 : f32 to vector<8x1xf32>
    %5 = arith.mulf %1, %4 : vector<8x1xf32>
    %6 = arith.mulf %3, %3 : vector<8x1xf32>
    %7 = arith.subf %5, %6 : vector<8x1xf32>
    %cst_3 = arith.constant 0.000000e+00 : f32
    %8 = vector.broadcast %cst_3 : f32 to vector<8x1xf32>
    %9 = arith.maximumf %7, %8 : vector<8x1xf32>
    %c0_4 = arith.constant 0 : index
    %c0_5 = arith.constant 0 : index
    %10 = vector.load %arg3[%c0_4, %c0_5] : memref<8x1xf32, #tpu.memory_space<vmem>>, vector<8x1xf32>
    %cst_6 = arith.constant 9.99999974E-6 : f32
    %11 = vector.broadcast %cst_6 : f32 to vector<8x1xf32>
    %12 = arith.addf %9, %11 : vector<8x1xf32>
    %13 = math.rsqrt %12 : vector<8x1xf32>
    %14 = arith.mulf %10, %13 : vector<8x1xf32>
    %c0_7 = arith.constant 0 : index
    %c0_8 = arith.constant 0 : index
    %15 = vector.load %arg4[%c0_7, %c0_8] : memref<8x1xf32, #tpu.memory_space<vmem>>, vector<8x1xf32>
    %16 = arith.mulf %3, %14 : vector<8x1xf32>
    %17 = arith.subf %15, %16 : vector<8x1xf32>
    %c0_9 = arith.constant 0 : index
    %c0_10 = arith.constant 0 : index
    %18 = vector.load %arg1[%c0_9, %c0_10] : memref<8x1024xf32, #tpu.memory_space<vmem>>, vector<8x1024xf32>
    %19 = vector.broadcast %14 : vector<8x1xf32> to vector<8x1024xf32>
    %20 = arith.mulf %18, %19 : vector<8x1024xf32>
    %21 = vector.broadcast %17 : vector<8x1xf32> to vector<8x1024xf32>
    %22 = arith.addf %20, %21 : vector<8x1024xf32>
    %cst_11 = arith.constant 0.000000e+00 : f32
    %23 = vector.broadcast %cst_11 : f32 to vector<8x1024xf32>
    %24 = arith.maximumf %22, %23 : vector<8x1024xf32>
    %c0_12 = arith.constant 0 : index
    %c0_13 = arith.constant 0 : index
    %25 = vector.load %arg5[%c0_12, %c0_13] : memref<8x1024xf32, #tpu.memory_space<vmem>>, vector<8x1024xf32>
    tpu.vector_store %arg5[%c0_12, %c0_13], %24 {strides = array<i32>} : memref<8x1024xf32, #tpu.memory_space<vmem>>, vector<8x1024xf32>,
    return
  }
  func.func @transform_0(%arg0: i32) -> (i32, i32) {
    %c0_i32 = arith.constant 0 : i32
    %c0_i32_0 = arith.constant 0 : i32
    return %c0_i32, %arg0 : i32, i32
  }
  func.func @transform_1(%arg0: i32) -> (i32, i32) {
    %c0_i32 = arith.constant 0 : i32
    %c0_i32_0 = arith.constant 0 : i32
    %c0_i32_1 = arith.constant 0 : i32
    return %c0_i32, %c0_i32_0 : i32, i32
  }
  func.func @transform_2(%arg0: i32) -> (i32, i32) {
    %c0_i32 = arith.constant 0 : i32
    %c0_i32_0 = arith.constant 0 : i32
    %c0_i32_1 = arith.constant 0 : i32
    return %c0_i32, %c0_i32_0 : i32, i32
  }
  func.func @transform_3(%arg0: i32) -> (i32, i32) {
    %c0_i32 = arith.constant 0 : i32
    %c0_i32_0 = arith.constant 0 : i32
    %c0_i32_1 = arith.constant 0 : i32
    return %c0_i32, %c0_i32_0 : i32, i32
  }
  func.func @transform_4(%arg0: i32) -> (i32, i32) {
    %c0_i32 = arith.constant 0 : i32
    %c0_i32_0 = arith.constant 0 : i32
    return %c0_i32, %arg0 : i32, i32
  }
}

</mosaic_0001>

<bundles_post_ra>
// kernel: upsample_n_concat_t1.3
= control target key start
LH: loop header
LB: loop body
LE: loop exit
PB: predicated region body
PF: predicated region fallthrough
CT: control target
= control target key end

     0   :  { %s389_s15 = smov 0   ;;  %s415_s0 = inlined_call_operand.vmem [shape: f32[8,2048], index: 0, kind: input, shape index: {}]   ;;  %s416_s1 = inlined_call_operand.vmem [shape: f32[8,128], index: 1, kind: input, shape index: {}]   ;;  %s417_s2 = inlined_call_operand.vmem [shape: f32[8,1], index: 2, kind: input, shape index: {}]   ;;  %s418_s3 = inlined_call_operand.vmem [shape: f32[8,1], index: 3, kind: input, shape index: {}]   ;;  %s419_s4 = inlined_call_operand.vmem [shape: f32[8,2048], index: 4, kind: output, shape index: {}]  }
   0x1 LB: > { %s327_s16 = sadd.s32 4294967295, %s359_s15   ;;  %p331_p0 = scmp.ge.s32.totalorder %s359_s15, 1  ;;  %s359_s15 = sphi %s389_s15, %s14_s15  }
   0x2   : > { %p163_p1 = scmp.lt.s32.totalorder %s359_s15, 3 }
   0x4   : > { %p164_p2 = pnand %p331_p0, %p163_p1 }
   0x5   : > { %v201_v0 = vld [vmem:[%s416_s1] sm:$0xff] (!%p164_p2)  ;;  %s361_s19 = smov (!%p164_p2), 1   ;;  %v362_v7 = vmov (!%p164_p2), 0   ;;  %s363_s20 = smov (!%p164_p2), 127  }
   0x6   : > { %167 = sbr.rel (%p164_p2) target bundleno = 399 (0x18f), region = 36  ;;  %v202_v1 = vmul.f32 (!%p164_p2), 0.00048828125, %v201_v0  ;;  %349 = vset.pattern.permute.xlu1 (!%p164_p2), %v362_v7  ;;  %350 = vset.pattern.permute.xlu0 (!%p164_p2), %v362_v7  ;;  %v210_v9 = vld [vmem:[%s417_s2] sm:$0xff] (!%p164_p2)  ;;  %s332_s25 = sshll.u32 (!%p164_p2), %s327_s16, 3 }
   0x7   : > { %v218_v12 = vld [vmem:[%s418_s3] sm:$0xff] (!%p164_p2)  ;;  %p190_p3 = scmp.lt.s32.totalorder (!%p164_p2), %s332_s25, 15 }
   0x8   : > { %v203_v2 = vmul.f32 (!%p164_p2), %v202_v1, %v202_v1 }
   0xa   : > { %205 = vrot.lane.b32.xlu0 (!%p164_p2), %v203_v2, %s361_s19 }
   0xd   : > { %s421_s25 = smov (!%p190_p3, %s332_s25), 15 }
   0xe   : > { %s333_s26 = sshll.u32 %s421_s25, 3 }
   0xf   : > { %s193_s29 = scalar_lea.vmem %s415_s0, %s333_s26  ;;  %s199_s6 = scalar_lea.vmem %s419_s4, %s333_s26 }
  0x10   : > { %v221_v15 = vld [vmem:[%s193_s29] sm:$0xff]  ;;  %v222_v16 = vld [vmem:[%s193_s29 + $0x8] sm:$0xff]  ;;  %v223_v18 = vld [vmem:[%s193_s29 + $0x10] sm:$0xff] }
  0x11   : > { %v224_v19 = vld [vmem:[%s193_s29 + $0x18] sm:$0xff]  ;;  %v225_v20 = vld [vmem:[%s193_s29 + $0x20] sm:$0xff]  ;;  %v226_v21 = vld [vmem:[%s193_s29 + $0x28] sm:$0xff] }
  0x12   : > { %v227_v22 = vld [vmem:[%s193_s29 + $0x30] sm:$0xff]  ;;  %v228_v23 = vld [vmem:[%s193_s29 + $0x38] sm:$0xff] }
  0x7c   : > { %v206_v3 = vpop.permute.xlu0 %205 }
  0x7d   : > { %v208_v4 = vsub.f32 %v202_v1, %v206_v3 }
  0x7f   : > { %v209_v5 = vmax.f32 %v208_v4, 0.0 }
  0x81   : > { %v211_v6 = vadd.f32 1e-05, %v209_v5 }
  0x83   : > { %351 = vrsqrt.f32 %v211_v6 }
  0x8d   : > { %v352_v8 = vpop.eup %351 }
  0x8e   : > { %214 = vrot.lane.b32.xlu0 %v352_v8, %s363_s20 }
 0x100   : > { %v215_v10 = vpop.permute.xlu0 %214 }
 0x101   : > { %v217_v11 = vmul.f32 %v215_v10, %v210_v9 }
 0x103   : > { %v219_v13 = vmul.f32 %v217_v11, %v202_v1  ;;  %231 = vperm.xlu1 %349, %v217_v11  }
 0x105   : > { %v220_v14 = vsub.f32 %v218_v12, %v219_v13 }
 0x107   : > { %244 = vperm.xlu1 %349, %v220_v14  }
 0x182   : > { %v232_v17 = vpop.permute.xlu1 %231 }
 0x183   : > { %v234_v24 = vmul.f32 %v232_v17, %v221_v15  ;;  %v235_v25 = vmul.f32 %v232_v17, %v222_v16  ;;  %v236_v26 = vmul.f32 %v232_v17, %v223_v18  ;;  %v237_v27 = vmul.f32 %v232_v17, %v224_v19 }
 0x184   : > { %v238_v29 = vmul.f32 %v232_v17, %v225_v20  ;;  %v239_v30 = vmul.f32 %v232_v17, %v226_v21  ;;  %v240_v31 = vmul.f32 %v232_v17, %v227_v22  ;;  %v241_v32 = vmul.f32 %v232_v17, %v228_v23 }
 0x186   : > { %v245_v28 = vpop.permute.xlu1 %244 }
 0x187   : > { %v247_v33 = vadd.f32 %v245_v28, %v234_v24  ;;  %v248_v34 = vadd.f32 %v245_v28, %v235_v25  ;;  %v249_v35 = vadd.f32 %v245_v28, %v236_v26  ;;  %v250_v36 = vadd.f32 %v245_v28, %v237_v27 }
 0x188   : > { %v251_v37 = vadd.f32 %v245_v28, %v238_v29  ;;  %v252_v38 = vadd.f32 %v245_v28, %v239_v30  ;;  %v253_v39 = vadd.f32 %v245_v28, %v240_v31  ;;  %v254_v40 = vadd.f32 %v245_v28, %v241_v32 }
 0x189   : > { %v255_v41 = vmax.f32 %v247_v33, 0.0  ;;  %v256_v42 = vmax.f32 %v248_v34, 0.0  ;;  %v257_v43 = vmax.f32 %v249_v35, 0.0  ;;  %v258_v44 = vmax.f32 %v250_v36, 0.0 }
 0x18a   : > { %v259_v45 = vmax.f32 %v251_v37, 0.0  ;;  %v260_v46 = vmax.f32 %v252_v38, 0.0  ;;  %v261_v47 = vmax.f32 %v253_v39, 0.0  ;;  %v262_v48 = vmax.f32 %v254_v40, 0.0 }
 0x18b   : > { %263 = vst [vmem:[%s199_s6] sm:$0xff] %v255_v41  ;;  %264 = vst [vmem:[%s199_s6 + $0x8] sm:$0xff] %v256_v42 }
 0x18c   : > { %265 = vst [vmem:[%s199_s6 + $0x10] sm:$0xff] %v257_v43  ;;  %266 = vst [vmem:[%s199_s6 + $0x18] sm:$0xff] %v258_v44 }
 0x18d   : > { %267 = vst [vmem:[%s199_s6 + $0x20] sm:$0xff] %v259_v45  ;;  %268 = vst [vmem:[%s199_s6 + $0x28] sm:$0xff] %v260_v46 }
 0x18e   : > { %269 = vst [vmem:[%s199_s6 + $0x30] sm:$0xff] %v261_v47  ;;  %270 = vst [vmem:[%s199_s6 + $0x38] sm:$0xff] %v262_v48 }
 0x18f PF: > { %s14_s15 = sadd.s32 1, %s359_s15  }
 0x190   : > { %p11_p4 = scmp.ge.s32.totalorder %s14_s15, 4  }
 0x192   :  { %13 = sbr.rel (!%p11_p4) target bundleno = 1 (0x1), region = 66 }

// kernel: upsample_n_concat_t1.2
= control target key start
LH: loop header
LB: loop body
LE: loop exit
PB: predicated region body
PF: predicated region fallthrough
CT: control target
= control target key end

     0   :  { %s1844_s18 = smov 0   ;;  %s1846_s19 = smov 0   ;;  %s2266_s0 = inlined_call_operand.vmem [shape: bf16[128,512], index: 0, kind: input, shape index: {}]   ;;  %s2267_s1 = inlined_call_operand.vmem [shape: bf16[32,32], index: 1, kind: input, shape index: {}]   ;;  %s2268_s2 = inlined_call_operand.vmem [shape: f32[8,1], index: 2, kind: input, shape index: {}]   ;;  %s2269_s3 = inlined_call_operand.vmem [shape: bf16[8,72], index: 3, kind: input, shape index: {}]   ;;  %s2270_s4 = inlined_call_operand.vmem [shape: f32[8,2048], index: 4, kind: output, shape index: {0}]   ;;  %s2271_s5 = inlined_call_operand.vmem [shape: f32[8,128], index: 5, kind: output, shape index: {1}]  }
   0x1   :  { %s1848_s20 = smov 0  }
   0x2 LB: > { %s1621_s21 = sadd.s32 4294967295, %s1801_s20   ;;  %s1861_s22 = sadd.s32 1, %s1801_s20   ;;  %s1801_s20 = sphi %s1848_s20, %s2278_s20   ;;  %s1797_s19 = sphi %s1846_s19, %s2277_s19   ;;  %s1793_s18 = sphi %s1844_s18, %s2276_s18  }
   0x3   : > { %s20_s23 = ssub.s32 %s1801_s20, %s1861_s22  ;;  %s23_s24 = sadd.s32 1, %s1797_s19 }
   0x4   : > { %p21_p0 = scmp.eq.s32.totalorder %s20_s23, 0  ;;  %p30_p1 = scmp.ne.s32.totalorder %s1797_s19, %s1793_s18 }
   0x5   : > { %p31_p2 = scmp.eq.s32.totalorder %s1801_s20, 0  ;;  %p1624_p4 = scmp.ge.s32.totalorder %s1801_s20, 2 }
   0x6   : > { %s1870_s25 = scalar_select %p21_p0, %s1797_s19, %s23_s24  }
   0x7   : > { %p32_p3 = por %p31_p2, %p30_p1  ;;  %175 = sbr.rel (%p1624_p4) target bundleno = 26 (0x1a), region = 28 }
   0xe   : > { %178 = sbr.rel (!%p32_p3) target bundleno = 26 (0x1a), region = 32  ;;  %s180_s26 = sand.u32 (%p32_p3), 1, %s1797_s19  }
   0xf   : > { %s1707_s27 = sshll.u32 (%p32_p3), %s1801_s20, 3  ;;  %s1625_s28 = sshll.u32 (%p32_p3), %s180_s26, 7 }
  0x10   : > { %s1878_s6 = scalar_lea.vmem (%p32_p3), %s2266_s0, %s1707_s27  ;;  %s182_s7 = scalar_lea.vmem (%p32_p3), [#allocation4], %s1625_s28 }
  0x11   : > { %v243_v0 = vld [vmem:[%s1878_s6] sm:$0xff] (%p32_p3)  ;;  %v245_v1 = vld [vmem:[%s1878_s6 + $0x10] sm:$0xff] (%p32_p3) }
  0x12   : > { %v247_v2 = vld [vmem:[%s1878_s6 + $0x20] sm:$0xff] (%p32_p3)  ;;  %244 = vst [vmem:[%s182_s7] sm:$0xff] (%p32_p3), %v243_v0  ;;  %246 = vst [vmem:[%s182_s7 + $0x8] sm:$0xff] (%p32_p3), %v245_v1  ;;  %v249_v3 = vld [vmem:[%s1878_s6 + $0x30] sm:$0xff] (%p32_p3) }
  0x13   : > { %248 = vst [vmem:[%s182_s7 + $0x10] sm:$0xff] (%p32_p3), %v247_v2  ;;  %v251_v4 = vld [vmem:[%s1878_s6 + $0x40] sm:$0xff] (%p32_p3)  ;;  %v253_v5 = vld [vmem:[%s1878_s6 + $0x50] sm:$0xff] (%p32_p3)  ;;  %250 = vst [vmem:[%s182_s7 + $0x18] sm:$0xff] (%p32_p3), %v249_v3 }
  0x14   : > { %252 = vst [vmem:[%s182_s7 + $0x20] sm:$0xff] (%p32_p3), %v251_v4  ;;  %254 = vst [vmem:[%s182_s7 + $0x28] sm:$0xff] (%p32_p3), %v253_v5  ;;  %v255_v6 = vld [vmem:[%s1878_s6 + $0x60] sm:$0xff] (%p32_p3)  ;;  %v257_v7 = vld [vmem:[%s1878_s6 + $0x70] sm:$0xff] (%p32_p3) }
  0x15   : > { %v259_v8 = vld [vmem:[%s1878_s6 + $0x80] sm:$0xff]  ;;  %256 = vst [vmem:[%s182_s7 + $0x30] sm:$0xff] %v255_v6  ;;  %258 = vst [vmem:[%s182_s7 + $0x38] sm:$0xff] %v257_v7  ;;  %v261_v9 = vld [vmem:[%s1878_s6 + $0x90] sm:$0xff] }
  0x16   : > { %260 = vst [vmem:[%s182_s7 + $0x40] sm:$0xff] %v259_v8  ;;  %v263_v10 = vld [vmem:[%s1878_s6 + $0xa0] sm:$0xff]  ;;  %v265_v11 = vld [vmem:[%s1878_s6 + $0xb0] sm:$0xff]  ;;  %262 = vst [vmem:[%s182_s7 + $0x48] sm:$0xff] %v261_v9 }
  0x17   : > { %264 = vst [vmem:[%s182_s7 + $0x50] sm:$0xff] %v263_v10  ;;  %266 = vst [vmem:[%s182_s7 + $0x58] sm:$0xff] %v265_v11  ;;  %v267_v12 = vld [vmem:[%s1878_s6 + $0xc0] sm:$0xff]  ;;  %v269_v13 = vld [vmem:[%s1878_s6 + $0xd0] sm:$0xff] }
  0x18   : > { %v271_v14 = vld [vmem:[%s1878_s6 + $0xe0] sm:$0xff]  ;;  %268 = vst [vmem:[%s182_s7 + $0x60] sm:$0xff] %v267_v12  ;;  %270 = vst [vmem:[%s182_s7 + $0x68] sm:$0xff] %v269_v13  ;;  %v273_v15 = vld [vmem:[%s1878_s6 + $0xf0] sm:$0xff] }
  0x19   : > { %272 = vst [vmem:[%s182_s7 + $0x70] sm:$0xff] %v271_v14  ;;  %274 = vst [vmem:[%s182_s7 + $0x78] sm:$0xff] %v273_v15 }
  0x1a PF: > { %p1628_p5 = scmp.ge.s32.totalorder %s1801_s20, 1  ;;  %p279_p6 = scmp.lt.s32.totalorder %s1801_s20, 3 }
  0x1c   : > { %p280_p7 = pnand %p1628_p5, %p279_p6 }
  0x1d   : > { %s286_s8 = sand.u32 (!%p280_p7), 1, %s1793_s18   ;;  %s1630_s9 = sshll.u32 (!%p280_p7), %s1621_s21, 3 }
  0x1e   : > { %283 = sbr.rel (%p280_p7) target bundleno = 849 (0x351), region = 70  ;;  %s1629_s10 = sshll.u32 (!%p280_p7), %s286_s8, 7 }
  0x1f   : > { %p315_p8 = scmp.lt.s32.totalorder (!%p280_p7), %s1630_s9, 15  ;;  %s1906_s15 = scalar_lea.vmem (!%p280_p7), [#allocation4], %s1629_s10 }
  0x20   : > { %p1632_p9 = scmp.ne.s32.totalorder (!%p280_p7), %s1621_s21, 0 }
  0x25   : > { %s2280_s9 = smov (!%p315_p8, %s1630_s9), 15  ;;  %326 = sbr.rel (%p1632_p9) target bundleno = 44 (0x2c), region = 78 }
  0x26   : > { %s1631_s11 = sshll.u32 %s2280_s9, 3  ;;  %v1803_v16 = vmov (!%p1632_p9), 0   ;;  %v1804_v17 = vmov (!%p1632_p9), 0.0  }
  0x27   : > { %s1904_s14 = scalar_lea.vmem %s2270_s4, %s1631_s11  ;;  %328 = vst [vmem:[#allocation2 + $0x8] sm:$0xff] (!%p1632_p9), %v1803_v16  ;;  %329 = vst [vmem:[#allocation2 + $0x10] sm:$0xff] (!%p1632_p9), %v1803_v16 }
  0x28   : > { %330 = vst [vmem:[#allocation2 + $0x18] sm:$0xff] (!%p1632_p9), %v1803_v16  ;;  %331 = vst [vmem:[#allocation2 + $0x20] sm:$0xff] (!%p1632_p9), %v1803_v16 }
  0x29   : > { %332 = vst [vmem:[#allocation2 + $0x28] sm:$0xff] (!%p1632_p9), %v1803_v16  ;;  %333 = vst [vmem:[#allocation2 + $0x30] sm:$0xff] (!%p1632_p9), %v1803_v16 }
  0x2a   : > { %334 = vst [vmem:[#allocation2 + $0x38] sm:$0xff] (!%p1632_p9), %v1803_v16  ;;  %335 = vst [vmem:[%s2271_s5] sm:$0xff] (!%p1632_p9), %v1804_v17 }
  0x2c PF: > { %v1749_v18 = vld [vmem:[%s1906_s15 + $0x4] ss:$8 sps:$4 sm:$0xff]   ;;  %v673_v19 = vlaneseq  ;;  %v1805_v21 = vmov 0   ;;  %v1753_v22 = vld [vmem:[%s1906_s15] ss:$8 sps:$4 sm:$0xff]   ;;  %vm367_vm0 = vcmask 261120  }
  0x2d   : > { %v1751_v20 = vld [vmem:[%s1906_s15 + $0x24] ss:$8 sps:$4 sm:$0xff]   ;;  %403 = vmatprep.mubr.bf16.mxu0 %v1805_v21  ;;  %487 = vmatprep.mubr.bf16.mxu1 %v1805_v21  ;;  %v1754_v23 = vld [vmem:[%s1906_s15 + $0x20] ss:$8 sps:$4 sm:$0xff]   ;;  %v1755_v24 = vld [vmem:[%s1906_s15 + $0x14] ss:$8 sps:$4 sm:$0xff]  }
  0x2e   : > { %371 = vmatprep.subr.bf16.mxu0 %v1749_v18  ;;  %1748 = vset.pattern.permute.xlu1 %v1805_v21  ;;  %v1922_v25 = vand.u32 127, %v673_v19  ;;  %v1757_v26 = vld [vmem:[%s1906_s15 + $0x34] ss:$8 sps:$4 sm:$0xff]   ;;  %v1759_v27 = vld [vmem:[%s1906_s15 + $0x10] ss:$8 sps:$4 sm:$0xff]   ;;  %v426_v42 = vld [vmem:[%s2268_s2] sm:$0xff] }
  0x2f   : > { %455 = vmatprep.subr.bf16.mxu1 %v1751_v20  ;;  %1747 = vset.pattern.permute.xlu0 %v1805_v21  ;;  %v1760_v28 = vld [vmem:[%s1906_s15 + $0x30] ss:$8 sps:$4 sm:$0xff]   ;;  %v340_v29 = vld [vmem:[%s2267_s1] sm:$0xf]  ;;  %v425_v30 = vld [vmem:[%s2267_s1 + $0x4] sm:$0xf] }
  0x30   : > { %372 = vmatpush1.bf16.msra.mxu0 %v1753_v22  ;;  %456 = vmatpush1.bf16.msra.mxu1 %v1754_v23  ;;  %v1761_v31 = vld [vmem:[%s1906_s15 + $0x40] ss:$8 sps:$4 sm:$0xff]   ;;  %v1763_v32 = vld [vmem:[%s1906_s15 + $0x44] ss:$8 sps:$4 sm:$0xff]   ;;  %v675_v33 = vadd.s32 128, %v1922_v25  ;;  %v676_v38 = vand.u32 15, %v1922_v25 }
  0x31   : > { %373 = vmatprep.subr.bf16.mxu0 %v1755_v24  ;;  %457 = vmatprep.subr.bf16.mxu1 %v1757_v26  ;;  %v1764_v34 = vld [vmem:[%s1906_s15 + $0x60] ss:$8 sps:$4 sm:$0xff]   ;;  %v1766_v35 = vld [vmem:[%s1906_s15 + $0x64] ss:$8 sps:$4 sm:$0xff]   ;;  %v1769_v36 = vld [vmem:[%s1906_s15 + $0x54] ss:$8 sps:$4 sm:$0xff]  }
  0x32   : > { %v1772_v37 = vld [vmem:[%s1906_s15 + $0x74] ss:$8 sps:$4 sm:$0xff]   ;;  %v677_v39 = vand.u32 15, %v675_v33  ;;  %v1767_v40 = vld [vmem:[%s1906_s15 + $0x50] ss:$8 sps:$4 sm:$0xff]   ;;  %429 = vperm.xlu1 %1748, %v426_v42   ;;  %597 = vperm.xlu0 %1747, %v426_v42   ;;  %vm678_vm1 = vcmp.gt.s32.totalorder %v676_v38, 0 }
  0x33   : > { %v1770_v41 = vld [vmem:[%s1906_s15 + $0x70] ss:$8 sps:$4 sm:$0xff]   ;;  %v509_v43 = vld [vmem:[%s2267_s1 + $0x8] sm:$0xf]  ;;  %v593_v44 = vld [vmem:[%s2267_s1 + $0xc] sm:$0xf] }
  0x34   : > { %374 = vmatpush1.bf16.msra.mxu0 %v1759_v27  ;;  %458 = vmatpush1.bf16.msra.mxu1 %v1760_v28  ;;  %vm679_vm2 = vcmp.gt.s32.totalorder %v677_v39, 0  ;;  %vm680_vm4 = vcmp.lt.s32.totalorder %v676_v38, 15  ;;  %vm681_vm5 = vcmp.lt.s32.totalorder %v677_v39, 15  ;;  %s1806_s6 = smov 127   ;;  %s1807_s7 = smov 111   ;;  %vm762_vm7 = vcmask 7168  }
  0x35   : > { %539 = vmatprep.subr.bf16.mxu0 %v1763_v32  ;;  %623 = vmatprep.subr.bf16.mxu1 %v1766_v35  ;;  %vm688_vm3 = vmpackc.low %vm679_vm2, %vm678_vm1  ;;  %s1808_s8 = smov 1   ;;  %s1809_s9 = smov 113   ;;  %v972_v52 = vld [vmem:[#allocation2 + $0xc] sm:$0xf]  ;;  %vm747_vm9 = vcmask 1039360   ;;  %vm693_vm14 = vcmask 908288  }
  0x36   : > { %344 = vperm.xlu1 %1748, %v426_v42   ;;  %513 = vperm.xlu0 %1747, %v426_v42   ;;  %v689_v45 = vsel %vm688_vm3, 65537, %v1805_v21  ;;  %vm943_vm6 = vmpackc.low %vm681_vm5, %vm680_vm4  ;;  %s1810_s10 = smov 15   ;;  %s1811_s11 = smov 17   ;;  %v998_v55 = vld [vmem:[#allocation2 + $0x2c] sm:$0xf]  ;;  %vm963_vm15 = vcmask 121856  }
  0x37   : > { %1637 = vmatmul.mubr.msk.bf16.vlgmr.msra.gmra.mrb[0].mxu0 %vm367_vm0, %v340_v29  ;;  %1643 = vmatmul.mubr.msk.bf16.vlgmr.msra.gmra.mrb[0].mxu1 %vm367_vm0, %v425_v30  ;;  %v944_v46 = vsel %vm943_vm6, 65537, %v1805_v21  ;;  %v1343_v58 = vld [vmem:[#allocation2 + $0xc] sm:$0xf]  ;;  %s1812_s12 = smov 16   ;;  %vm948_vm2 = vcmask 924672   ;;  %s1813_s13 = smov 112  }
  0x38   : > { %540 = vmatpush1.bf16.msra.mxu0 %v1761_v31  ;;  %624 = vmatpush1.bf16.msra.mxu1 %v1764_v34 }
  0x39   : > { %541 = vmatprep.subr.bf16.mxu0 %v1769_v36  ;;  %625 = vmatprep.subr.bf16.mxu1 %v1772_v37 }
  0x3a   : > { %571 = vmatprep.mubr.bf16.mxu0 %v1805_v21  ;;  %655 = vmatprep.mubr.bf16.mxu1 %v1805_v21 }
  0x3b   : > { %744 = vrot.lane.b32.xlu1 %v689_v45, %s1806_s6  ;;  %690 = vrot.lane.b32.xlu0 %v689_v45, %s1807_s7 }
  0x3c   : > { %542 = vmatpush1.bf16.msra.mxu0 %v1767_v40  ;;  %626 = vmatpush1.bf16.msra.mxu1 %v1770_v41 }
  0x3f   : > { %1649 = vmatmul.mubr.msk.bf16.vlgmr.msra.gmra.mrb[4].mxu0 %vm367_vm0, %v509_v43  ;;  %1655 = vmatmul.mubr.msk.bf16.vlgmr.msra.gmra.mrb[4].mxu1 %vm367_vm0, %v593_v44 }
  0x40   : > { %888 = vmatprep.mubr.bf16.mxu0 %v1805_v21  ;;  %1109 = vmatprep.mubr.bf16.mxu1 %v1805_v21 }
  0x41   : > { %973 = vrot.lane.b32.xlu1 %v944_v46, %s1808_s8  ;;  %945 = vrot.lane.b32.xlu0 %v944_v46, %s1809_s9 }
  0x45   : > { %1172 = vrot.lane.b32.xlu0 %v689_v45, %s1810_s10  ;;  %1408 = vrot.lane.b32.xlu1 %v944_v46, %s1811_s11 }
  0xb1   : > { %v430_v47 = vpop.permute.xlu1 %429  ;;  %v598_v60 = vpop.permute.xlu0 %597 }
  0xb5   : > { %v345_v48 = vpop.permute.xlu1 %344  ;;  %v514_v12 = vpop.permute.xlu0 %513 }
  0xb9   : > { %v745_v49 = vpop.permute.xlu1 %744  ;;  %v691_v40 = vpop.permute.xlu0 %690 }
  0xba   : > { %v746_v11 = vrot.slane %v745_v49, 4  ;;  %v692_v43 = vrot.slane %v691_v40, 4 }
  0xbc   : > { %v2006_v19 = vsel %vm747_vm9, %v746_v11, %v745_v49  ;;  %vm2021_vm11 = vcmp.ne.s16.totalorder %v746_v11, 0  ;;  %vm696_vm13 = vcmp.ne.s16.totalorder %v692_v43, 0 }
  0xbd   : > { %v974_v50 = vpop.permute.xlu1 %973  ;;  %vm749_vm10 = vcmp.ne.s16.totalorder %v2006_v19, 0  ;;  %v946_v44 = vpop.permute.xlu0 %945 }
  0xbe   : > { %v975_v51 = vrot.slane %v974_v50, 4 }
  0xc0   : > { %v1969_v53 = vsel %vm762_vm7, %v975_v51, %v974_v50  ;;  %vm1971_vm8 = vcmp.ne.s16.totalorder %v975_v51, 0  ;;  %v947_v50 = vrot.slane %v946_v44, 4  ;;  %v1363_v51 = vld [vmem:[#allocation2 + $0x2c] sm:$0xf] }
  0xc1   : > { %v980_v56 = vsel %vm1971_vm8, %v972_v52, 0  ;;  %v1000_v57 = vsel %vm1971_vm8, %v998_v55, 0  ;;  %v1345_v59 = vsel %vm1971_vm8, %v1343_v58, 0  ;;  %vm977_vm12 = vcmp.ne.s16.totalorder %v1969_v53, 0 }
  0xc2   : > { %985 = vrot.lane.b32.xlu1 %v980_v56, %s1806_s6  ;;  %v694_v52 = vsel %vm693_vm14, %v692_v43, %v691_v40  ;;  %v1365_v56 = vsel %vm1971_vm8, %v1363_v51, 0  ;;  %vm951_vm1 = vcmp.ne.s16.totalorder %v947_v50, 0  ;;  %v949_v54 = vsel %vm948_vm2, %v947_v50, %v946_v44 }
  0xc3   : > { %vm695_vm0 = vcmp.ne.s16.totalorder %v694_v52, 0  ;;  %vm950_vm4 = vcmp.ne.s16.totalorder %v949_v54, 0  ;;  %vm709_vm8 = vcmask 138240  }
  0xc6   : > { %1005 = vrot.lane.b32.xlu1 %v1000_v57, %s1806_s6 }
  0xca   : > { %1350 = vrot.lane.b32.xlu1 %v1345_v59, %s1806_s6 }
 0x10a   : > { %v405_v61 = vpop.f32.mrb[0].mxu0  ;;  %v489_v62 = vpop.f32.mrb[0].mxu1 }
 0x10b   : > { %v1984_v63 = vadd.f32 %v405_v61, %v345_v48  ;;  %v1986_v0 = vadd.f32 %v489_v62, %v430_v47  ;;  %v407_v1 = vpop.f32.mrb[1].mxu0  ;;  %v491_v2 = vpop.f32.mrb[1].mxu1 }
 0x10c   : > { %v1988_v3 = vadd.f32 %v407_v1, %v345_v48  ;;  %v1990_v4 = vadd.f32 %v491_v2, %v430_v47  ;;  %v493_v5 = vpop.f32.mrb[2].mxu1  ;;  %v409_v6 = vpop.f32.mrb[2].mxu0  ;;  %v1171_v2 = vld [vmem:[#allocation2 + $0x1c] sm:$0xf] }
 0x10d   : > { %v494_v7 = vpop.f32.mrb[3].mxu1  ;;  %v410_v8 = vpop.f32.mrb[3].mxu0 }
 0x10e   : > { %v1994_v9 = vpack.c.bf16 %v1988_v3, %v1984_v63  ;;  %v1998_v10 = vpack.c.bf16 %v1990_v4, %v1986_v0  ;;  %v1173_v47 = vpop.permute.xlu0 %1172  ;;  %v1193_v7 = vld [vmem:[#allocation2 + $0xc] sm:$0xf] }
 0x10f   : > { %v1174_v55 = vrot.slane %v1173_v47, 4 }
 0x110   : > { %504 = vst [vmem:[#allocation2 + $0x14] sm:$0xff] %v1998_v10  ;;  %v979_v37 = vsel %vm977_vm12, %v1994_v9, 0 }
 0x111   : > { %v1175_v58 = vsel %vm963_vm15, %v1174_v55, %v1173_v47  ;;  %vm1177_vm5 = vcmp.ne.s16.totalorder %v1174_v55, 0 }
 0x112   : > { %v573_v13 = vpop.f32.mrb[4].mxu0  ;;  %v657_v14 = vpop.f32.mrb[4].mxu1  ;;  %vm1176_vm3 = vcmp.ne.s16.totalorder %v1175_v58, 0  ;;  %v1179_v5 = vsel %vm1177_vm5, %v1171_v2, 0 }
 0x113   : > { %v2001_v15 = vadd.f32 %v573_v13, %v514_v12  ;;  %v2003_v16 = vadd.f32 %v657_v14, %v598_v60  ;;  %v659_v17 = vpop.f32.mrb[5].mxu1  ;;  %v575_v18 = vpop.f32.mrb[5].mxu0  ;;  %v1178_v1 = vsel %vm1176_vm3, %v1998_v10, 0  ;;  %v1379_v13 = vld [vmem:[#allocation2 + $0xc] sm:$0xf] }
 0x114   : > { %v2008_v20 = vadd.f32 %v659_v17, %v598_v60  ;;  %v2010_v22 = vadd.f32 %v575_v18, %v514_v12  ;;  %v577_v23 = vpop.f32.mrb[6].mxu0  ;;  %v661_v24 = vpop.f32.mrb[6].mxu1  ;;  %v1393_v17 = vld [vmem:[#allocation2 + $0x1c] sm:$0xf] }
 0x115   : > { %v578_v26 = vpop.f32.mrb[7].mxu0  ;;  %v662_v27 = vpop.f32.mrb[7].mxu1  ;;  %v1208_v23 = vld [vmem:[#allocation2 + $0x1c] sm:$0xf]  ;;  %v1407_v24 = vld [vmem:[#allocation2 + $0xc] sm:$0xf] }
 0x116   : > { %v2014_v28 = vpack.c.bf16 %v2008_v20, %v2003_v16  ;;  %v2018_v29 = vpack.c.bf16 %v2010_v22, %v2001_v15  ;;  %v1409_v14 = vpop.permute.xlu1 %1408 }
 0x117   : > { %v742_v31 = vld [vmem:[#allocation2 + $0x10] sm:$0xff]  ;;  %v743_v32 = vld [vmem:[#allocation2 + $0x18] sm:$0xf]  ;;  %v1410_v19 = vrot.slane %v1409_v14, 4 }
 0x118   : > { %672 = vst [vmem:[#allocation2 + $0x34] sm:$0xff] %v2014_v28  ;;  %588 = vst [vmem:[#allocation2 + $0x24] sm:$0xff] %v2018_v29  ;;  %v751_v33 = vsel %vm749_vm10, %v742_v31, 0  ;;  %v752_v34 = vsel %vm2021_vm11, %v743_v32, 0  ;;  %v1131_v35 = vld [vmem:[#allocation2 + $0x18] sm:$0xf] }
 0x119   : > { %755 = vrot.lane.b32.xlu0 %v751_v33, %s1808_s8  ;;  %757 = vrot.lane.b32.xlu1 %v752_v34, %s1808_s8  ;;  %v1133_v36 = vsel %vm2021_vm11, %v1131_v35, 0  ;;  %v999_v18 = vsel %vm977_vm12, %v2018_v29, 0  ;;  %vm1413_vm6 = vcmp.ne.s16.totalorder %v1410_v19, 0  ;;  %v1411_v53 = vsel %vm709_vm8, %v1410_v19, %v1409_v14 }
 0x11a   : > { %v1415_v26 = vsel %vm1413_vm6, %v1407_v24, 0  ;;  %vm724_vm12 = vcmask 130048  }
 0x11d   : > { %1138 = vrot.lane.b32.xlu1 %v1133_v36, %s1808_s8  ;;  %983 = vrot.lane.b32.xlu0 %v979_v37, %s1806_s6 }
 0x11f   : > { %v714_v38 = vld [vmem:[#allocation2 + $0x28] sm:$0xf]  ;;  %v924_v41 = vld [vmem:[#allocation2 + $0x38] sm:$0xf]  ;;  %v713_v42 = vld [vmem:[#allocation2 + $0x20] sm:$0xff] }
 0x120   : > { %v910_v39 = vld [vmem:[#allocation2 + $0x28] sm:$0xf]  ;;  %v729_v45 = vld [vmem:[#allocation2 + $0x38] sm:$0xf]  ;;  %v923_v49 = vld [vmem:[#allocation2 + $0x30] sm:$0xff]  ;;  %v952_v6 = vsel %vm950_vm4, %v713_v42, 0 }
 0x121   : > { %719 = vrot.lane.b32.xlu1 %v714_v38, %s1812_s12  ;;  %1136 = vrot.lane.b32.xlu0 %v751_v33, %s1808_s8  ;;  %v683_v46 = vld [vmem:[#allocation2 + $0x38] sm:$0xf]  ;;  %v938_v57 = vld [vmem:[#allocation2 + $0x28] sm:$0xf]  ;;  %v697_v60 = vsel %vm695_vm0, %v923_v49, 0  ;;  %v772_v8 = vsel %vm749_vm10, %v923_v49, 0 }
 0x122   : > { %v698_v48 = vsel %vm696_vm13, %v683_v46, 0  ;;  %v953_v59 = vsel %vm951_vm1, %v938_v57, 0  ;;  %v771_v61 = vld [vmem:[#allocation2 + $0x38] sm:$0xf]  ;;  %vm1412_vm10 = vcmp.ne.s16.totalorder %v1411_v53, 0  ;;  %vm845_vm13 = vcmask 588800  }
 0x123   : > { %v773_v62 = vsel %vm2021_vm11, %v771_v61, 0  ;;  %v1151_v11 = vld [vmem:[#allocation2 + $0x38] sm:$0xf]  ;;  %v1414_v27 = vsel %vm1412_vm10, %v1994_v9, 0 }
 0x124   : > { %v1153_v12 = vsel %vm2021_vm11, %v1151_v11, 0  ;;  %vm707_vm11 = vcmask 1043456  }
 0x125   : > { %915 = vrot.lane.b32.xlu1 %v910_v39, %s1812_s12  ;;  %1348 = vrot.lane.b32.xlu0 %v979_v37, %s1806_s6 }
 0x129   : > { %929 = vrot.lane.b32.xlu1 %v924_v41, %s1812_s12  ;;  %717 = vrot.lane.b32.xlu0 %v713_v42, %s1812_s12 }
 0x12d   : > { %734 = vrot.lane.b32.xlu1 %v729_v45, %s1812_s12  ;;  %913 = vrot.lane.b32.xlu0 %v713_v42, %s1812_s12 }
 0x131   : > { %703 = vrot.lane.b32.xlu1 %v698_v48, %s1811_s11  ;;  %927 = vrot.lane.b32.xlu0 %v923_v49, %s1812_s12 }
 0x134   : > { %v2087_v30 = vpop.permute.xlu1 %985 }
 0x135   : > { %1370 = vrot.lane.b32.xlu1 %v1365_v56, %s1806_s6  ;;  %732 = vrot.lane.b32.xlu0 %v923_v49, %s1812_s12 }
 0x138   : > { %v2089_v31 = vpop.permute.xlu1 %1005 }
 0x139   : > { %958 = vrot.lane.b32.xlu1 %v953_v59, %s1810_s10  ;;  %701 = vrot.lane.b32.xlu0 %v697_v60, %s1811_s11 }
 0x13c   : > { %v2091_v32 = vpop.permute.xlu1 %1350 }
 0x13d   : > { %778 = vrot.lane.b32.xlu1 %v773_v62, %s1808_s8  ;;  %1182 = vrot.lane.b32.xlu0 %v1178_v1, %s1809_s9 }
 0x141   : > { %1184 = vrot.lane.b32.xlu1 %v1179_v5, %s1809_s9  ;;  %956 = vrot.lane.b32.xlu0 %v952_v6, %s1810_s10 }
 0x145   : > { %1198 = vrot.lane.b32.xlu1 %v1193_v7, %s1813_s13  ;;  %776 = vrot.lane.b32.xlu0 %v772_v8, %s1808_s8 }
 0x149   : > { %1158 = vrot.lane.b32.xlu1 %v1153_v12, %s1808_s8  ;;  %1196 = vrot.lane.b32.xlu0 %v1994_v9, %s1813_s13 }
 0x14d   : > { %1384 = vrot.lane.b32.xlu1 %v1379_v13, %s1813_s13  ;;  %1382 = vrot.lane.b32.xlu0 %v1994_v9, %s1813_s13 }
 0x151   : > { %1003 = vrot.lane.b32.xlu0 %v999_v18, %s1806_s6  ;;  %1398 = vrot.lane.b32.xlu1 %v1393_v17, %s1813_s13 }
 0x155   : > { %1156 = vrot.lane.b32.xlu0 %v772_v8, %s1808_s8  ;;  %1213 = vrot.lane.b32.xlu1 %v1208_v23, %s1813_s13 }
 0x159   : > { %1396 = vrot.lane.b32.xlu0 %v1998_v10, %s1813_s13  ;;  %1420 = vrot.lane.b32.xlu1 %v1415_v26, %s1807_s7 }
 0x15d   : > { %1368 = vrot.lane.b32.xlu0 %v999_v18, %s1806_s6 }
 0x161   : > { %1211 = vrot.lane.b32.xlu0 %v1998_v10, %s1813_s13 }
 0x165   : > { %1418 = vrot.lane.b32.xlu0 %v1414_v27, %s1807_s7 }
 0x18b   : > { %v756_v33 = vpop.permute.xlu0 %755  ;;  %v758_v34 = vpop.permute.xlu1 %757 }
 0x18c   : > { %v759_v62 = vrot.slane %v756_v33, 4  ;;  %v760_v1 = vrot.slane %v758_v34, 4 }
 0x18e   : > { %v761_v14 = vsel %vm707_vm11, %v759_v62, %v760_v1 }
 0x18f   : > { %v2093_v35 = vpop.permute.xlu1 %1138  ;;  %v2095_v36 = vpop.permute.xlu0 %983 }
 0x190   : > { %v987_v53 = vrot.slane %v2095_v36, 4 }
 0x193   : > { %v720_v37 = vpop.permute.xlu1 %719  ;;  %v2097_v38 = vpop.permute.xlu0 %1136 }
 0x194   : > { %v722_v2 = vrot.slane %v720_v37, 4  ;;  %v763_v37 = vsel %vm762_vm7, %v756_v33, %v761_v14  ;;  %v1140_v33 = vrot.slane %v2097_v38, 4  ;;  %v1008_v14 = vrot.slane %v2089_v31, 4 }
 0x197   : > { %v916_v39 = vpop.permute.xlu1 %915  ;;  %v2099_v40 = vpop.permute.xlu0 %1348 }
 0x198   : > { %v918_v46 = vrot.slane %v916_v39, 4  ;;  %v988_v39 = vrot.slane %v2087_v30, 4 }
 0x19b   : > { %v930_v41 = vpop.permute.xlu1 %929  ;;  %v718_v42 = vpop.permute.xlu0 %717 }
 0x19c   : > { %v932_v49 = vrot.slane %v930_v41, 4  ;;  %v721_v59 = vrot.slane %v718_v42, 4 }
 0x19e   : > { %v723_v8 = vsel %vm707_vm11, %v721_v59, %v722_v2  ;;  %v2155_v2 = vpack.c.bf16 %v2008_v20, %v2010_v22 }
 0x19f   : > { %v735_v43 = vpop.permute.xlu1 %734  ;;  %v914_v44 = vpop.permute.xlu0 %913  ;;  %v725_v18 = vsel %vm724_vm12, %v718_v42, %v723_v8 }
 0x1a0   : > { %v917_v45 = vrot.slane %v914_v44, 4  ;;  %v737_v5 = vrot.slane %v735_v43, 4 }
 0x1a2   : > { %v919_v50 = vsel %vm707_vm11, %v917_v45, %v918_v46 }
 0x1a3   : > { %v704_v47 = vpop.permute.xlu1 %703  ;;  %v928_v48 = vpop.permute.xlu0 %927  ;;  %v920_v55 = vsel %vm724_vm12, %v914_v44, %v919_v50  ;;  %v989_v44 = vsel %vm707_vm11, %v987_v53, %v988_v39 }
 0x1a4   : > { %v931_v51 = vrot.slane %v928_v48, 4  ;;  %v706_v11 = vrot.slane %v704_v47, 4  ;;  %v990_v30 = vsel %vm747_vm9, %v2095_v36, %v989_v44 }
 0x1a5   : > { %v1674_v36 = vcombine.high %v1998_v10, %v990_v30 }
 0x1a6   : > { %v933_v52 = vsel %vm707_vm11, %v931_v51, %v932_v49  ;;  %v2125_v49 = vpack.c.bf16 %v1990_v4, %v1988_v3  ;;  %v2138_v3 = vpack.c.bf16 %v1986_v0, %v1984_v63  ;;  %v1141_v4 = vrot.slane %v2093_v35, 4 }
 0x1a7   : > { %v934_v56 = vsel %vm724_vm12, %v928_v48, %v933_v52  ;;  %v2105_v57 = vpop.permute.xlu1 %1370  ;;  %v733_v58 = vpop.permute.xlu0 %732  ;;  %v1673_v0 = vcombine.low %v1998_v10, %v990_v30  ;;  %v1775_v35 = vpack.c.bf16 %v2008_v20, %v2008_v20 }
 0x1a8   : > { %v1669_v60 = vcombine.low %v920_v55, %v934_v56  ;;  %v1670_v61 = vcombine.high %v920_v55, %v934_v56  ;;  %v736_v54 = vrot.slane %v733_v58, 4  ;;  %v1142_v62 = vsel %vm707_vm11, %v1140_v33, %v1141_v4 }
 0x1aa   : > { %1077 = vmatprep.subr.bf16.mxu1 %v1670_v61  ;;  %v738_v12 = vsel %vm707_vm11, %v736_v54, %v737_v5  ;;  %v1777_v5 = vpack.c.bf16 %v2003_v16, %v2003_v16 }
 0x1ab   : > { %v959_v6 = vpop.permute.xlu1 %958  ;;  %1078 = vmatpush1.bf16.msra.mxu1 %v1669_v60  ;;  %v702_v7 = vpop.permute.xlu0 %701  ;;  %v739_v19 = vsel %vm724_vm12, %v733_v58, %v738_v12  ;;  %v1352_v12 = vrot.slane %v2099_v40, 4 }
 0x1ac   : > { %v705_v13 = vrot.slane %v702_v7, 4  ;;  %v1660_v41 = vcombine.high %v739_v19, %v763_v37  ;;  %v961_v45 = vrot.slane %v959_v6, 4  ;;  %v1659_v47 = vcombine.low %v739_v19, %v763_v37 }
 0x1ad   : > { %v1143_v6 = vsel %vm762_vm7, %v2097_v38, %v1142_v62  ;;  %v851_v22 = vsel %vm707_vm11, %v1777_v5, 0 }
 0x1ae   : > { %v708_v17 = vsel %vm707_vm11, %v705_v13, %v706_v11  ;;  %v2167_v11 = vpack.c.bf16 %v2003_v16, %v2001_v15  ;;  %v1682_v20 = vcombine.high %v1143_v6, %v1994_v9  ;;  %v790_v13 = vld [vmem:[%s2269_s3] sm:$0xf]  ;;  %v1353_v15 = vrot.slane %v2091_v32, 4 }
 0x1af   : > { %v710_v23 = vsel %vm709_vm8, %v702_v7, %v708_v17  ;;  %v779_v24 = vpop.permute.xlu1 %778  ;;  %v2114_v26 = vpop.permute.xlu0 %1182  ;;  %v1681_v16 = vcombine.low %v1143_v6, %v1994_v9 }
 0x1b0   : > { %v1657_v27 = vcombine.low %v710_v23, %v725_v18  ;;  %v1658_v34 = vcombine.high %v710_v23, %v725_v18  ;;  %v781_v52 = vrot.slane %v779_v24, 4  ;;  %v1354_v23 = vsel %vm707_vm11, %v1352_v12, %v1353_v15 }
 0x1b2   : > { %856 = vmatprep.subr.bf16.mxu0 %v1658_v34 }
 0x1b3   : > { %v2119_v43 = vpop.permute.xlu1 %1184  ;;  %857 = vmatpush1.bf16.msra.mxu0 %v1657_v27  ;;  %v957_v42 = vpop.permute.xlu0 %956 }
 0x1b4   : > { %v960_v46 = vrot.slane %v957_v42, 4  ;;  %858 = vmatprep.subr.bf16.mxu0 %v1660_v41  ;;  %v1187_v41 = vrot.slane %v2119_v43, 4  ;;  %v1013_v43 = vld [vmem:[%s2269_s3] sm:$0xf] }
 0x1b6   : > { %v962_v48 = vsel %vm707_vm11, %v960_v46, %v961_v45  ;;  %v1355_v45 = vsel %vm747_vm9, %v2099_v40, %v1354_v23  ;;  %v1186_v46 = vrot.slane %v2114_v26, 4 }
 0x1b7   : > { %v964_v50 = vsel %vm963_vm15, %v957_v42, %v962_v48  ;;  %859 = vmatpush1.bf16.msra.mxu0 %v1659_v47  ;;  %v777_v51 = vpop.permute.xlu0 %776  ;;  %v2134_v59 = vpop.permute.xlu1 %1198  ;;  %vm1203_vm15 = vcmask 916480  }
 0x1b8   : > { %v1671_v55 = vcombine.low %v964_v50, %v1994_v9  ;;  %v1672_v56 = vcombine.high %v964_v50, %v1994_v9  ;;  %v780_v58 = vrot.slane %v777_v51, 4  ;;  %860 = vmatprep.subr.bf16.mxu0 %v2125_v49  ;;  %v1201_v24 = vrot.slane %v2134_v59, 4 }
 0x1ba   : > { %v782_v60 = vsel %vm707_vm11, %v780_v58, %v781_v52  ;;  %1079 = vmatprep.subr.bf16.mxu1 %v1672_v56  ;;  %v1188_v56 = vsel %vm707_vm11, %v1186_v46, %v1187_v41 }
 0x1bb   : > { %v783_v61 = vsel %vm762_vm7, %v777_v51, %v782_v60  ;;  %v2144_v54 = vpop.permute.xlu0 %1196  ;;  %861 = vmatpush1.bf16.msra.mxu0 %v2138_v3  ;;  %1080 = vmatpush1.bf16.msra.mxu1 %v1671_v55  ;;  %v1159_v7 = vpop.permute.xlu1 %1158  ;;  %v1696_v55 = vcombine.high %v1355_v45, %v2018_v29  ;;  %v1189_v62 = vsel %vm948_vm2, %v2114_v26, %v1188_v56 }
 0x1bc   : > { %v1663_v1 = vcombine.low %v783_v61, %v2018_v29  ;;  %v1664_v63 = vcombine.high %v783_v61, %v2018_v29  ;;  %1081 = vmatprep.subr.bf16.mxu1 %v1674_v36  ;;  %v1200_v53 = vrot.slane %v2144_v54, 4  ;;  %v1161_v32 = vrot.slane %v1159_v7, 4 }
 0x1bd   : > { %v1695_v61 = vcombine.low %v1355_v45, %v2018_v29 }
 0x1be   : > { %862 = vmatprep.subr.bf16.mxu0 %v1664_v63  ;;  %v1202_v47 = vsel %vm707_vm11, %v1200_v53, %v1201_v24  ;;  %v1428_v24 = vld [vmem:[%s2269_s3] sm:$0xf] }
 0x1bf   : > { %v2161_v8 = vpop.permute.xlu0 %1382  ;;  %863 = vmatpush1.bf16.msra.mxu0 %v1663_v1  ;;  %1082 = vmatpush1.bf16.msra.mxu1 %v1673_v0  ;;  %v1385_v18 = vpop.permute.xlu1 %1384  ;;  %v1204_v4 = vsel %vm1203_vm15, %v2144_v54, %v1202_v47 }
 0x1c0   : > { %1667 = vmatprep.subr.msk.bf16.mxu0 %vm707_vm11, %v1775_v35  ;;  %1083 = vmatprep.subr.bf16.mxu1 %v2155_v2  ;;  %v1387_v58 = vrot.slane %v1385_v18, 4  ;;  %v1386_v59 = vrot.slane %v2161_v8, 4  ;;  %v1688_v54 = vcombine.high %v1189_v62, %v1204_v4  ;;  %v1687_v5 = vcombine.low %v1189_v62, %v1204_v4 }
 0x1c2   : > { %v1388_v1 = vsel %vm707_vm11, %v1386_v59, %v1387_v58 }
 0x1c3   : > { %v1004_v38 = vpop.permute.xlu0 %1003  ;;  %865 = vmatpush1.bf16.msra.mxu0 %v851_v22  ;;  %1084 = vmatpush1.bf16.msra.mxu1 %v2167_v11  ;;  %v1399_v39 = vpop.permute.xlu1 %1398  ;;  %v1389_v6 = vsel %vm1203_vm15, %v2161_v8, %v1388_v1 }
 0x1c4   : > { %v1007_v17 = vrot.slane %v1004_v38, 4  ;;  %1285 = vmatprep.subr.bf16.mxu0 %v1682_v20  ;;  %v1401_v51 = vrot.slane %v1399_v39, 4 }
 0x1c6   : > { %v1009_v19 = vsel %vm707_vm11, %v1007_v17, %v1008_v14  ;;  %1668 = vmatmul.mubr.msk.bf16.vlgmr.msra.gmra.mrb[8].mxu0 %vm845_vm13, %v790_v13 }
 0x1c7   : > { %v1010_v27 = vsel %vm747_vm9, %v1004_v38, %v1009_v19  ;;  %v1157_v31 = vpop.permute.xlu0 %1156  ;;  %1286 = vmatpush1.bf16.msra.mxu0 %v1681_v16  ;;  %1317 = vmatprep.mubr.bf16.mxu0 %v1805_v21  ;;  %v1214_v40 = vpop.permute.xlu1 %1213  ;;  %v1221_v16 = vld [vmem:[%s2269_s3] sm:$0xf] }
 0x1c8   : > { %v1677_v34 = vcombine.low %v1010_v27, %v1010_v27  ;;  %v1678_v9 = vcombine.high %v1010_v27, %v1010_v27  ;;  %v1160_v37 = vrot.slane %v1157_v31, 4  ;;  %v1216_v63 = vrot.slane %v1214_v40, 4 }
 0x1ca   : > { %v1162_v42 = vsel %vm707_vm11, %v1160_v37, %v1161_v32  ;;  %1679 = vmatprep.subr.msk.bf16.mxu1 %vm707_vm11, %v1678_v9  ;;  %v1072_v44 = vsel %vm707_vm11, %v1677_v34, 0 }
 0x1cb   : > { %v1163_v48 = vsel %vm762_vm7, %v1157_v31, %v1162_v42  ;;  %v1397_v30 = vpop.permute.xlu0 %1396  ;;  %1086 = vmatpush1.bf16.msra.mxu1 %v1072_v44  ;;  %v1421_v29 = vpop.permute.xlu1 %1420  ;;  %vm1546_vm7 = vcmp.eq.s32.totalorder %v1922_v25, 0 }
 0x1cc   : > { %v1683_v33 = vcombine.low %v1998_v10, %v1163_v48  ;;  %v1684_v50 = vcombine.high %v1998_v10, %v1163_v48  ;;  %v1400_v52 = vrot.slane %v1397_v30, 4  ;;  %1492 = vmatprep.subr.bf16.mxu1 %v2125_v49  ;;  %v1373_v10 = vrot.slane %v2105_v57, 4 }
 0x1cd   : > { %v1423_v22 = vrot.slane %v1421_v29, 4 }
 0x1ce   : > { %1680 = vmatmul.mubr.msk.bf16.vlgmr.msra.gmra.mrb[8].mxu1 %vm845_vm13, %v1013_v43  ;;  %1287 = vmatprep.subr.bf16.mxu0 %v1684_v50  ;;  %v1402_v49 = vsel %vm707_vm11, %v1400_v52, %v1401_v51 }
 0x1cf   : > { %v1369_v36 = vpop.permute.xlu0 %1368  ;;  %1288 = vmatpush1.bf16.msra.mxu0 %v1683_v33  ;;  %1493 = vmatpush1.bf16.msra.mxu1 %v2138_v3  ;;  %v1403_v57 = vsel %vm1203_vm15, %v1397_v30, %v1402_v49 }
 0x1d0   : > { %v1372_v60 = vrot.slane %v1369_v36, 4  ;;  %1289 = vmatprep.subr.bf16.mxu0 %v2155_v2  ;;  %1494 = vmatprep.subr.bf16.mxu1 %v1696_v55  ;;  %v1700_v7 = vcombine.high %v1389_v6, %v1403_v57 }
 0x1d1   : > { %1524 = vmatprep.mubr.bf16.mxu1 %v1805_v21 }
 0x1d2   : > { %v1374_v3 = vsel %vm707_vm11, %v1372_v60, %v1373_v10 }
 0x1d3   : > { %v1375_v0 = vsel %vm747_vm9, %v1369_v36, %v1374_v3  ;;  %v1212_v35 = vpop.permute.xlu0 %1211  ;;  %1290 = vmatpush1.bf16.msra.mxu0 %v2167_v11  ;;  %1495 = vmatpush1.bf16.msra.mxu1 %v1695_v61  ;;  %vm1548_vm9 = vcmp.eq.s32.totalorder %v1922_v25, 1 }
 0x1d4   : > { %v1697_v2 = vcombine.low %v2014_v28, %v1375_v0  ;;  %v1698_v26 = vcombine.high %v2014_v28, %v1375_v0  ;;  %v1215_v21 = vrot.slane %v1212_v35, 4  ;;  %1291 = vmatprep.subr.bf16.mxu0 %v1688_v54  ;;  %v1699_v28 = vcombine.low %v1389_v6, %v1403_v57 }
 0x1d6   : > { %v1217_v20 = vsel %vm707_vm11, %v1215_v21, %v1216_v63  ;;  %1496 = vmatprep.subr.bf16.mxu1 %v1698_v26 }
 0x1d7   : > { %v1218_v12 = vsel %vm1203_vm15, %v1212_v35, %v1217_v20  ;;  %v1419_v11 = vpop.permute.xlu0 %1418  ;;  %1292 = vmatpush1.bf16.msra.mxu0 %v1687_v5  ;;  %1497 = vmatpush1.bf16.msra.mxu1 %v1697_v2  ;;  %v1545_v20 = vld [vmem:[%s2271_s5] sm:$0xff] }
 0x1d8   : > { %v1689_v38 = vcombine.low %v1218_v12, %v1218_v12  ;;  %v1690_v13 = vcombine.high %v1218_v12, %v1218_v12  ;;  %v1422_v14 = vrot.slane %v1419_v11, 4  ;;  %1498 = vmatprep.subr.bf16.mxu1 %v1700_v7 }
 0x1da   : > { %v1424_v17 = vsel %vm707_vm11, %v1422_v14, %v1423_v22  ;;  %1691 = vmatprep.subr.msk.bf16.mxu0 %vm707_vm11, %v1690_v13  ;;  %v1280_v8 = vsel %vm707_vm11, %v1689_v38, 0 }
 0x1db   : > { %v1425_v15 = vsel %vm693_vm14, %v1419_v11, %v1424_v17  ;;  %1294 = vmatpush1.bf16.msra.mxu0 %v1280_v8  ;;  %1499 = vmatpush1.bf16.msra.mxu1 %v1699_v28 }
 0x1dc   : > { %v1701_v18 = vcombine.low %v1425_v15, %v1425_v15  ;;  %v1702_v19 = vcombine.high %v1425_v15, %v1425_v15 }
 0x1de   : > { %1692 = vmatmul.mubr.msk.bf16.vlgmr.msra.gmra.mrb[12].mxu0 %vm845_vm13, %v1221_v16  ;;  %1703 = vmatprep.subr.msk.bf16.mxu1 %vm707_vm11, %v1702_v19  ;;  %v1487_v23 = vsel %vm707_vm11, %v1701_v18, 0 }
 0x1df   : > { %1501 = vmatpush1.bf16.msra.mxu1 %v1487_v23 }
 0x1e2   : > { %1704 = vmatmul.mubr.msk.bf16.vlgmr.msra.gmra.mrb[12].mxu1 %vm845_vm13, %v1428_v24 }
 0x299   : > { %v890_v53 = vpop.f32.mrb[8].mxu0 }
 0x29a   : > { %897 = vst [vmem:[%s1904_s14] sm:$0xff] %v890_v53  ;;  %v892_v27 = vpop.f32.mrb[9].mxu0  ;;  %v903_v31 = vmul.f32 %v890_v53, %v890_v53 }
 0x29b   : > { %898 = vst [vmem:[%s1904_s14 + $0x8] sm:$0xff] %v892_v27  ;;  %v894_v32 = vpop.f32.mrb[10].mxu0  ;;  %v904_v34 = vmul.f32 %v892_v27, %v892_v27  ;;  %v899_v9 = vadd.f32 %v892_v27, %v890_v53 }
 0x29c   : > { %v895_v37 = vpop.f32.mrb[11].mxu0 }
 0x29d   : > { %v905_v39 = vadd.f32 %v904_v34, %v903_v31 }
 0x29f   : > { %906 = vadd.xlane.f32.xlu1 %v905_v39 }
 0x2a1   : > { %v1111_v41 = vpop.f32.mrb[8].mxu1 }
 0x2a2   : > { %1118 = vst [vmem:[%s1904_s14 + $0x10] sm:$0xff] %v1111_v41  ;;  %v1113_v42 = vpop.f32.mrb[9].mxu1  ;;  %v1124_v44 = vmul.f32 %v1111_v41, %v1111_v41 }
 0x2a3   : > { %1119 = vst [vmem:[%s1904_s14 + $0x18] sm:$0xff] %v1113_v42  ;;  %v1115_v45 = vpop.f32.mrb[10].mxu1  ;;  %v1120_v46 = vadd.f32 %v1113_v42, %v1111_v41  ;;  %v1125_v47 = vmul.f32 %v1113_v42, %v1113_v42 }
 0x2a4   : > { %v1116_v48 = vpop.f32.mrb[11].mxu1 }
 0x2a5   : > { %1121 = vadd.xlane.f32.xlu0 %v1120_v46  ;;  %v1126_v30 = vadd.f32 %v1125_v47, %v1124_v44 }
 0x2a9   : > { %900 = vadd.xlane.f32.xlu0 %v899_v9 }
 0x2ad   : > { %1127 = vadd.xlane.f32.xlu0 %v1126_v30 }
 0x2b1   : > { %v1319_v43 = vpop.f32.mrb[12].mxu0 }
 0x2b2   : > { %1326 = vst [vmem:[%s1904_s14 + $0x20] sm:$0xff] %v1319_v43  ;;  %v1321_v33 = vpop.f32.mrb[13].mxu0  ;;  %v1332_v50 = vmul.f32 %v1319_v43, %v1319_v43 }
 0x2b3   : > { %1327 = vst [vmem:[%s1904_s14 + $0x28] sm:$0xff] %v1321_v33  ;;  %v1323_v51 = vpop.f32.mrb[14].mxu0  ;;  %v1328_v52 = vadd.f32 %v1321_v33, %v1319_v43  ;;  %v1333_v40 = vmul.f32 %v1321_v33, %v1321_v33 }
 0x2b4   : > { %v1324_v55 = vpop.f32.mrb[15].mxu0 }
 0x2b5   : > { %v1526_v56 = vpop.f32.mrb[12].mxu1  ;;  %1329 = vadd.xlane.f32.xlu1 %v1328_v52  ;;  %v1334_v58 = vadd.f32 %v1333_v40, %v1332_v50 }
 0x2b6   : > { %1533 = vst [vmem:[%s1904_s14 + $0x30] sm:$0xff] %v1526_v56  ;;  %v1528_v59 = vpop.f32.mrb[13].mxu1  ;;  %v1539_v4 = vmul.f32 %v1526_v56, %v1526_v56 }
 0x2b7   : > { %1534 = vst [vmem:[%s1904_s14 + $0x38] sm:$0xff] %v1528_v59  ;;  %v1530_v36 = vpop.f32.mrb[14].mxu1  ;;  %1335 = vadd.xlane.f32.xlu0 %v1334_v58  ;;  %v1535_v10 = vadd.f32 %v1528_v59, %v1526_v56  ;;  %v1540_v49 = vmul.f32 %v1528_v59, %v1528_v59 }
 0x2b8   : > { %v1531_v60 = vpop.f32.mrb[15].mxu1 }
 0x2b9   : > { %1536 = vadd.xlane.f32.xlu1 %v1535_v10  ;;  %v1541_v61 = vadd.f32 %v1540_v49, %v1539_v4 }
 0x2bb   : > { %1542 = vadd.xlane.f32.xlu0 %v1541_v61 }
 0x32c   : > { %v907_v1 = vpop.xlane.xlu1 %906 }
 0x332   : > { %v1122_v62 = vpop.xlane.xlu0 %1121 }
 0x336   : > { %v901_v54 = vpop.xlane.xlu0 %900 }
 0x337   : > { %v1123_v57 = vadd.f32 %v1122_v62, %v901_v54 }
 0x33a   : > { %v1128_v3 = vpop.xlane.xlu0 %1127 }
 0x33b   : > { %v1129_v35 = vadd.f32 %v1128_v3, %v907_v1 }
 0x342   : > { %v1330_v63 = vpop.xlane.xlu1 %1329 }
 0x343   : > { %v1331_v29 = vadd.f32 %v1330_v63, %v1123_v57 }
 0x344   : > { %v1336_v0 = vpop.xlane.xlu0 %1335 }
 0x345   : > { %v1337_v26 = vadd.f32 %v1336_v0, %v1129_v35 }
 0x346   : > { %v1537_v2 = vpop.xlane.xlu1 %1536 }
 0x347   : > { %v1538_v21 = vadd.f32 %v1537_v2, %v1331_v29 }
 0x348   : > { %v1543_v5 = vpop.xlane.xlu0 %1542 }
 0x349   : > { %v1544_v6 = vadd.f32 %v1543_v5, %v1337_v26  ;;  %v1547_v7 = vsel %vm1546_vm7, %v1538_v21, 0.0 }
 0x34b   : > { %v1549_v22 = vsel %vm1548_vm9, %v1544_v6, 0.0 }
 0x34c   : > { %v1550_v12 = vadd.f32 %v1549_v22, %v1547_v7 }
 0x34e   : > { %v1551_v11 = vadd.f32 %v1550_v12, %v1545_v20 }
 0x350   : > { %1552 = vst [vmem:[%s2271_s5] sm:$0xff] %v1551_v11 }
 0x351 PF: > { %p13_p10 = scmp.ge.s32.totalorder %s1861_s22, 4   ;;  %s2276_s18 = smov %s1797_s19 }
 0x352   : > { %s2277_s19 = smov %s1870_s25  ;;  %s2278_s20 = smov %s1861_s22 }
 0x353   :  { %15 = sbr.rel (!%p13_p10) target bundleno = 2 (0x2), region = 121 }

</bundles_post_ra>
